<compile_context>
chip_gen: v7x
topology: tpu7x:2x2x1
jax: 0.10.0
libtpu: 0.0.40
codegen_flags: <defaults>
</compile_context>

<pallas_src>
import math

import numpy as np

import jax
import jax.numpy as jnp
from jax.experimental import pallas as pl
from jax.experimental.pallas import tpu as pltpu

WINDOW_SIZE = 11
SIGMA = 1.5
DATA_RANGE = 1.0
K1, K2 = 0.01, 0.03
C1 = (K1 * DATA_RANGE) ** 2
C2 = (K2 * DATA_RANGE) ** 2

LANES = 128  # TODO(synk): benchmark a 256-lane packing target on v6e/v7x.


def _gaussian_np(window_size, sigma):
    g = np.array(
        [math.exp(-((x - window_size // 2) ** 2) / (2.0 * sigma ** 2))
         for x in range(window_size)], dtype=np.float64)
    g = g / g.sum()
    return g.astype(np.float32)


def _conv_matrix_np(n, g, window_size):
    # A[i, k] = g[k - i + pad]; (row @ A.T) == zero-padded "same" correlation.
    pad = window_size // 2
    a = np.zeros((n, n), dtype=np.float32)
    for i in range(n):
        for k in range(max(0, i - pad), min(n, i + pad + 1)):
            a[i, k] = g[k - i + pad]
    return a


def ssim_loss_pallas(img1, img2, window_size=WINDOW_SIZE, sigma=SIGMA):
    N, C, H, W = img1.shape
    NC = N * C
    g_np = _gaussian_np(window_size, sigma)
    gauss = tuple(float(v) for v in g_np)   # static taps baked into the kernel
    half = window_size // 2

    # ---- lane packing geometry: pack G images side-by-side, pad to 128 ----
    G = max(1, LANES // W) if W <= LANES else 1
    GW = G * W
    GWp = ((GW + LANES - 1) // LANES) * LANES

    # Block-diagonal, transposed W-direction conv matrix, zero-padded to GWp.
    aw_t = _conv_matrix_np(W, g_np, window_size).T
    awt_np = np.zeros((GWp, GWp), dtype=np.float32)
    for gi in range(G):
        awt_np[gi * W:(gi + 1) * W, gi * W:(gi + 1) * W] = aw_t
    awt = jnp.asarray(awt_np)

    # ---- slab / grid geometry ----
    m_slabs = -(-NC // G)                      # packed (H, GWp) slabs needed
    P = 2 if m_slabs >= 2 else 1               # megacore split (v7x); no-op on 1-TC

    # VMEM-aware block sizing + explicit scoped-VMEM limit.
    try:
        vmem_cap = int(pltpu.get_tpu_info().vmem_capacity_bytes)
    except Exception:  # pragma: no cover - conservative fallback
        vmem_cap = 64 * 2 ** 20
    vmem_limit = int(min(vmem_cap * 3 // 4, 100 * 2 ** 20))
    per_slab_bytes = 40 * H * GWp * 4          # rough live bytes per slab/step
    B = max(1, min(vmem_limit // (3 * per_slab_bytes), -(-m_slabs // P)))
    steps = -(-m_slabs // (P * B))
    m_pad = P * steps * B                      # padded slab count
    NCp = m_pad * G                            # padded image count

    # Blocks read the ORIGINAL layout; pad the image axis only if needed.
    x1 = img1.astype(jnp.float32).reshape(NC, H, W)
    x2 = img2.astype(jnp.float32).reshape(NC, H, W)
    if NCp != NC:
        x1 = jnp.pad(x1, ((0, NCp - NC), (0, 0), (0, 0)))
        x2 = jnp.pad(x2, ((0, NCp - NC), (0, 0), (0, 0)))

    # Per-(slab, lane) validity mask (padded images / padded lanes -> 0).
    lane = np.arange(GWp)
    img_idx = np.arange(m_pad)[:, None, None] * G + (lane[None, None, :] // W)
    lm = ((img_idx < NC) & (lane[None, None, :] < GW)).astype(np.float32)
    lmask = jnp.asarray(lm)                    # (m_pad, 1, GWp)

    BIMG = B * G
    PADR = 8                                   # sublane-aligned zero pad (>= 5)

    def kernel(awt_ref, x1_ref, x2_ref, m_ref, out_ref, acc_ref):
        i = pl.program_id(1)

        @pl.when(i == 0)
        def _init():
            acc_ref[...] = jnp.zeros_like(acc_ref)

        def pack(ref):
            # (B*G, H, W) block -> lane-packed (B*H, GWp) slab, in VMEM.
            x4 = ref[...].reshape(B, G, H, W)
            parts = [x4[:, gi, :, :] for gi in range(G)]
            if GWp > GW:
                parts.append(jnp.zeros((B, H, GWp - GW), jnp.float32))
            return jnp.concatenate(parts, axis=-1).reshape(B * H, GWp)

        p1 = pack(x1_ref)
        p2 = pack(x2_ref)

        # Five conv operands fused into one slab -> single MXU matmul (W conv).
        s = jnp.concatenate([p1, p2, p1 * p1, p2 * p2, p1 * p2], axis=0)
        sw = jnp.dot(s, awt_ref[...], preferred_element_type=jnp.float32)
        sw3 = sw.reshape(5 * B, H, GWp)

        # H-direction conv: 11-tap shift+FMA along sublanes (zero boundaries).
        z = jnp.zeros((5 * B, PADR, GWp), jnp.float32)
        swp = jnp.concatenate([z, sw3, z], axis=1)      # (5B, H + 2*PADR, GWp)
        off0 = PADR - half
        y = gauss[0] * swp[:, off0:off0 + H, :]
        for t in range(1, window_size):
            y = y + gauss[t] * swp[:, off0 + t:off0 + t + H, :]

        mu1 = y[0 * B:1 * B]
        mu2 = y[1 * B:2 * B]
        s11 = y[2 * B:3 * B]
        s22 = y[3 * B:4 * B]
        s12 = y[4 * B:5 * B]

        mu1_sq = mu1 * mu1
        mu2_sq = mu2 * mu2
        mu1_mu2 = mu1 * mu2
        sigma1_sq = jnp.maximum(s11 - mu1_sq, 0.0)
        sigma2_sq = jnp.maximum(s22 - mu2_sq, 0.0)
        sigma12 = s12 - mu1_mu2

        num = (2.0 * mu1_mu2 + C1) * (2.0 * sigma12 + C2)
        den = (mu1_sq + mu2_sq + C1) * (sigma1_sq + sigma2_sq + C2)
        # EUP reciprocal + one Newton step (keeps f32 accuracy off the VPU path).
        r = pl.reciprocal(den, approx=True)
        r = r * (2.0 - den * r)
        ssim_map = num * r

        # Elementwise accumulate only; masked lanes contribute 0.
        acc_ref[...] += ssim_map * m_ref[...]

        @pl.when(i == pl.num_programs(1) - 1)
        def _fin():
            # Defer the cross-lane reduce: sublane/slab reduce here, lanes + the
            # per-core partials are summed in the wrapper.
            out_ref[...] = jnp.sum(acc_ref[...], axis=(0, 1), keepdims=True)

    out = pl.pallas_call(
        kernel,
        out_shape=jax.ShapeDtypeStruct((P, 1, GWp), jnp.float32),
        grid_spec=pltpu.PrefetchScalarGridSpec(
            num_scalar_prefetch=0,
            grid=(P, steps),
            in_specs=[
                # Constant 64 KiB conv matrix (the large (H,H) matrix is gone,
                # so double-buffer waste here is negligible).
                pl.BlockSpec((GWp, GWp), lambda p, i: (0, 0)),
                pl.BlockSpec((BIMG, H, W), lambda p, i: (p * steps + i, 0, 0)),
                pl.BlockSpec((BIMG, H, W), lambda p, i: (p * steps + i, 0, 0)),
                pl.BlockSpec((B, 1, GWp), lambda p, i: (p * steps + i, 0, 0)),
            ],
            out_specs=pl.BlockSpec((1, 1, GWp), lambda p, i: (p, 0, 0)),
            scratch_shapes=[pltpu.VMEM((B, H, GWp), jnp.float32)],
        ),
        compiler_params=pltpu.CompilerParams(
            dimension_semantics=("parallel", "arbitrary"),
            vmem_limit_bytes=vmem_limit),
    )(awt, x1, x2, lmask)

    return 1.0 - jnp.sum(out) / float(NC * H * W)


def ssim_loss_reference(img1, img2, window_size=WINDOW_SIZE, sigma=SIGMA):
    # Pure-JAX reference (grouped conv2d, same semantics as the PyTorch module).
    N, C, H, W = img1.shape
    g = jnp.asarray(_gaussian_np(window_size, sigma))
    w2d = jnp.outer(g, g)
    window = jnp.broadcast_to(w2d, (C, 1, window_size, window_size))
    pad = window_size // 2

    def conv(x):
        return jax.lax.conv_general_dilated(
            x, window, window_strides=(1, 1),
            padding=[(pad, pad), (pad, pad)],
            dimension_numbers=("NCHW", "OIHW", "NCHW"),
            feature_group_count=C)

    mu1, mu2 = conv(img1), conv(img2)
    mu1_sq, mu2_sq, mu1_mu2 = mu1 * mu1, mu2 * mu2, mu1 * mu2
    sigma1_sq = jnp.maximum(conv(img1 * img1) - mu1_sq, 0.0)
    sigma2_sq = jnp.maximum(conv(img2 * img2) - mu2_sq, 0.0)
    sigma12 = conv(img1 * img2) - mu1_mu2
    ssim_map = ((2 * mu1_mu2 + C1) * (2 * sigma12 + C2)) / (
        (mu1_sq + mu2_sq + C1) * (sigma1_sq + sigma2_sq + C2))
    return 1.0 - jnp.mean(ssim_map)


if __name__ == "__main__":
    key = jax.random.PRNGKey(0)
    k1, k2, k3, k4 = jax.random.split(key, 4)

    # Case 1: module-default shapes (channel=3); NC=6 -> one padded+masked slab.
    n1, c1, H, W = 2, 3, 16, 16
    a1 = jax.random.uniform(k1, (n1, c1, H, W), dtype=jnp.float32)
    a2 = jax.random.uniform(k2, (n1, c1, H, W), dtype=jnp.float32)
    loss = jax.block_until_ready(ssim_loss_pallas(a1, a2))
    ref = jax.block_until_ready(ssim_loss_reference(a1, a2))
    assert jnp.allclose(loss, ref, atol=2e-5, rtol=2e-5), (loss, ref)

    # Case 2: larger batch -> exercises the 2-way parallel split + masking.
    n2, c2 = 4, 3
    b1 = jax.random.uniform(k3, (n2, c2, H, W), dtype=jnp.float32)
    b2 = jax.random.uniform(k4, (n2, c2, H, W), dtype=jnp.float32)
    loss2 = jax.block_until_ready(ssim_loss_pallas(b1, b2))
    ref2 = jax.block_until_ready(ssim_loss_reference(b1, b2))
    assert jnp.allclose(loss2, ref2, atol=2e-5, rtol=2e-5), (loss2, ref2)

    print("KERNEL_OK")
</pallas_src>

<mosaic_0001>
module attributes {stable_mosaic.version = 11 : i64} {
  func.func @kernel(%arg0: i32, %arg1: i32, %arg2: memref<128x128xf32, #tpu.memory_space<vmem>>, %arg3: memref<8x16x16xf32, #tpu.memory_space<vmem>>, %arg4: memref<8x16x16xf32, #tpu.memory_space<vmem>>, %arg5: memref<1x1x128xf32, #tpu.memory_space<vmem>>, %arg6: memref<1x1x128xf32, #tpu.memory_space<vmem>>, %arg7: memref<1x16x128xf32, #tpu.memory_space<vmem>>) attributes {dimension_semantics = [#tpu.dimension_semantics<parallel>, #tpu.dimension_semantics<arbitrary>], iteration_bounds = array<i64: 1, 1>, scalar_prefetch = 0 : i64, scratch_operands = 1 : i64, tpu.core_type = #tpu.core_type<tc>, window_params = [{pipeline_mode = #tpu.pipeline_mode<synchronous>, transform_indices = @transform_0, window_bounds = array<i64: 128, 128>}, {transform_indices = @transform_1, window_bounds = array<i64: 8, 16, 16>}, {transform_indices = @transform_2, window_bounds = array<i64: 8, 16, 16>}, {transform_indices = @transform_3, window_bounds = array<i64: 1, 1, 128>}, {transform_indices = @transform_4, window_bounds = array<i64: 1, 1, 128>}]} {
    %c0_i32 = arith.constant 0 : i32
    %0 = arith.cmpi eq, %arg1, %c0_i32 : i32
    %1 = arith.extui %0 : i1 to i32
    %c0_i32_0 = arith.constant 0 : i32
    %2 = arith.cmpi ne, %1, %c0_i32_0 : i32
    scf.if %2 {
      %cst_40 = arith.constant 0.000000e+00 : f32
      %141 = vector.broadcast %cst_40 : f32 to vector<1x16x128xf32>
      %c0_41 = arith.constant 0 : index
      %c0_42 = arith.constant 0 : index
      %c0_43 = arith.constant 0 : index
      %142 = vector.load %arg7[%c0_41, %c0_42, %c0_43] : memref<1x16x128xf32, #tpu.memory_space<vmem>>, vector<1x16x128xf32>
      tpu.vector_store %arg7[%c0_41, %c0_42, %c0_43], %141 {strides = array<i32>} : memref<1x16x128xf32, #tpu.memory_space<vmem>>, vector<1x16x128xf32>,
    } else {
    }
    %c0 = arith.constant 0 : index
    %c0_1 = arith.constant 0 : index
    %c0_2 = arith.constant 0 : index
    %3 = vector.load %arg3[%c0, %c0_1, %c0_2] : memref<8x16x16xf32, #tpu.memory_space<vmem>>, vector<8x16x16xf32>
    %4 = vector.shape_cast %3 : vector<8x16x16xf32> to vector<1x8x16x16xf32>
    %5 = vector.extract_strided_slice %4 {offsets = [0, 0, 0, 0], sizes = [1, 1, 16, 16], strides = [1, 1, 1, 1]} : vector<1x8x16x16xf32> to vector<1x1x16x16xf32>
    %6 = vector.shape_cast %5 : vector<1x1x16x16xf32> to vector<1x16x16xf32>
    %7 = vector.extract_strided_slice %4 {offsets = [0, 1, 0, 0], sizes = [1, 1, 16, 16], strides = [1, 1, 1, 1]} : vector<1x8x16x16xf32> to vector<1x1x16x16xf32>
    %8 = vector.shape_cast %7 : vector<1x1x16x16xf32> to vector<1x16x16xf32>
    %9 = vector.extract_strided_slice %4 {offsets = [0, 2, 0, 0], sizes = [1, 1, 16, 16], strides = [1, 1, 1, 1]} : vector<1x8x16x16xf32> to vector<1x1x16x16xf32>
    %10 = vector.shape_cast %9 : vector<1x1x16x16xf32> to vector<1x16x16xf32>
    %11 = vector.extract_strided_slice %4 {offsets = [0, 3, 0, 0], sizes = [1, 1, 16, 16], strides = [1, 1, 1, 1]} : vector<1x8x16x16xf32> to vector<1x1x16x16xf32>
    %12 = vector.shape_cast %11 : vector<1x1x16x16xf32> to vector<1x16x16xf32>
    %13 = vector.extract_strided_slice %4 {offsets = [0, 4, 0, 0], sizes = [1, 1, 16, 16], strides = [1, 1, 1, 1]} : vector<1x8x16x16xf32> to vector<1x1x16x16xf32>
    %14 = vector.shape_cast %13 : vector<1x1x16x16xf32> to vector<1x16x16xf32>
    %15 = vector.extract_strided_slice %4 {offsets = [0, 5, 0, 0], sizes = [1, 1, 16, 16], strides = [1, 1, 1, 1]} : vector<1x8x16x16xf32> to vector<1x1x16x16xf32>
    %16 = vector.shape_cast %15 : vector<1x1x16x16xf32> to vector<1x16x16xf32>
    %17 = vector.extract_strided_slice %4 {offsets = [0, 6, 0, 0], sizes = [1, 1, 16, 16], strides = [1, 1, 1, 1]} : vector<1x8x16x16xf32> to vector<1x1x16x16xf32>
    %18 = vector.shape_cast %17 : vector<1x1x16x16xf32> to vector<1x16x16xf32>
    %19 = vector.extract_strided_slice %4 {offsets = [0, 7, 0, 0], sizes = [1, 1, 16, 16], strides = [1, 1, 1, 1]} : vector<1x8x16x16xf32> to vector<1x1x16x16xf32>
    %20 = vector.shape_cast %19 : vector<1x1x16x16xf32> to vector<1x16x16xf32>
    %21 = tpu.concatenate %6, %8, %10, %12, %14, %16, %18, %20 in 2 : vector<1x16x16xf32>, vector<1x16x16xf32>, vector<1x16x16xf32>, vector<1x16x16xf32>, vector<1x16x16xf32>, vector<1x16x16xf32>, vector<1x16x16xf32>, vector<1x16x16xf32> -> vector<1x16x128xf32>
    %22 = vector.shape_cast %21 : vector<1x16x128xf32> to vector<16x128xf32>
    %c0_3 = arith.constant 0 : index
    %c0_4 = arith.constant 0 : index
    %c0_5 = arith.constant 0 : index
    %23 = vector.load %arg4[%c0_3, %c0_4, %c0_5] : memref<8x16x16xf32, #tpu.memory_space<vmem>>, vector<8x16x16xf32>
    %24 = vector.shape_cast %23 : vector<8x16x16xf32> to vector<1x8x16x16xf32>
    %25 = vector.extract_strided_slice %24 {offsets = [0, 0, 0, 0], sizes = [1, 1, 16, 16], strides = [1, 1, 1, 1]} : vector<1x8x16x16xf32> to vector<1x1x16x16xf32>
    %26 = vector.shape_cast %25 : vector<1x1x16x16xf32> to vector<1x16x16xf32>
    %27 = vector.extract_strided_slice %24 {offsets = [0, 1, 0, 0], sizes = [1, 1, 16, 16], strides = [1, 1, 1, 1]} : vector<1x8x16x16xf32> to vector<1x1x16x16xf32>
    %28 = vector.shape_cast %27 : vector<1x1x16x16xf32> to vector<1x16x16xf32>
    %29 = vector.extract_strided_slice %24 {offsets = [0, 2, 0, 0], sizes = [1, 1, 16, 16], strides = [1, 1, 1, 1]} : vector<1x8x16x16xf32> to vector<1x1x16x16xf32>
    %30 = vector.shape_cast %29 : vector<1x1x16x16xf32> to vector<1x16x16xf32>
    %31 = vector.extract_strided_slice %24 {offsets = [0, 3, 0, 0], sizes = [1, 1, 16, 16], strides = [1, 1, 1, 1]} : vector<1x8x16x16xf32> to vector<1x1x16x16xf32>
    %32 = vector.shape_cast %31 : vector<1x1x16x16xf32> to vector<1x16x16xf32>
    %33 = vector.extract_strided_slice %24 {offsets = [0, 4, 0, 0], sizes = [1, 1, 16, 16], strides = [1, 1, 1, 1]} : vector<1x8x16x16xf32> to vector<1x1x16x16xf32>
    %34 = vector.shape_cast %33 : vector<1x1x16x16xf32> to vector<1x16x16xf32>
    %35 = vector.extract_strided_slice %24 {offsets = [0, 5, 0, 0], sizes = [1, 1, 16, 16], strides = [1, 1, 1, 1]} : vector<1x8x16x16xf32> to vector<1x1x16x16xf32>
    %36 = vector.shape_cast %35 : vector<1x1x16x16xf32> to vector<1x16x16xf32>
    %37 = vector.extract_strided_slice %24 {offsets = [0, 6, 0, 0], sizes = [1, 1, 16, 16], strides = [1, 1, 1, 1]} : vector<1x8x16x16xf32> to vector<1x1x16x16xf32>
    %38 = vector.shape_cast %37 : vector<1x1x16x16xf32> to vector<1x16x16xf32>
    %39 = vector.extract_strided_slice %24 {offsets = [0, 7, 0, 0], sizes = [1, 1, 16, 16], strides = [1, 1, 1, 1]} : vector<1x8x16x16xf32> to vector<1x1x16x16xf32>
    %40 = vector.shape_cast %39 : vector<1x1x16x16xf32> to vector<1x16x16xf32>
    %41 = tpu.concatenate %26, %28, %30, %32, %34, %36, %38, %40 in 2 : vector<1x16x16xf32>, vector<1x16x16xf32>, vector<1x16x16xf32>, vector<1x16x16xf32>, vector<1x16x16xf32>, vector<1x16x16xf32>, vector<1x16x16xf32>, vector<1x16x16xf32> -> vector<1x16x128xf32>
    %42 = vector.shape_cast %41 : vector<1x16x128xf32> to vector<16x128xf32>
    %43 = arith.mulf %22, %22 : vector<16x128xf32>
    %44 = arith.mulf %42, %42 : vector<16x128xf32>
    %45 = arith.mulf %22, %42 : vector<16x128xf32>
    %46 = tpu.concatenate %22, %42, %43, %44, %45 in 0 : vector<16x128xf32>, vector<16x128xf32>, vector<16x128xf32>, vector<16x128xf32>, vector<16x128xf32> -> vector<80x128xf32>
    %c0_6 = arith.constant 0 : index
    %c0_7 = arith.constant 0 : index
    %47 = vector.load %arg2[%c0_6, %c0_7] : memref<128x128xf32, #tpu.memory_space<vmem>>, vector<128x128xf32>
    %cst = arith.constant dense<0.000000e+00> : vector<80x128xf32>
    %48 = tpu.matmul %46, %47, %cst {dimension_numbers = #tpu.dot_dimension_numbers<[1], [0], [0], [1], [0, 0, 1, 1], [], []>} : vector<80x128xf32>, vector<128x128xf32>, vector<80x128xf32> -> vector<80x128xf32>
    %49 = vector.shape_cast %48 : vector<80x128xf32> to vector<5x16x128xf32>
    %cst_8 = arith.constant 0.000000e+00 : f32
    %50 = vector.broadcast %cst_8 : f32 to vector<5x8x128xf32>
    %51 = tpu.concatenate %50, %49, %50 in 1 : vector<5x8x128xf32>, vector<5x16x128xf32>, vector<5x8x128xf32> -> vector<5x32x128xf32>
    %52 = vector.extract_strided_slice %51 {offsets = [0, 3, 0], sizes = [5, 16, 128], strides = [1, 1, 1]} : vector<5x32x128xf32> to vector<5x16x128xf32>
    %cst_9 = arith.constant 0.00102838012 : f32
    %53 = vector.broadcast %cst_9 : f32 to vector<5x16x128xf32>
    %54 = arith.mulf %53, %52 : vector<5x16x128xf32>
    %55 = vector.extract_strided_slice %51 {offsets = [0, 4, 0], sizes = [5, 16, 128], strides = [1, 1, 1]} : vector<5x32x128xf32> to vector<5x16x128xf32>
    %cst_10 = arith.constant 0.00759875821 : f32
    %56 = vector.broadcast %cst_10 : f32 to vector<5x16x128xf32>
    %57 = arith.mulf %56, %55 : vector<5x16x128xf32>
    %58 = arith.addf %54, %57 : vector<5x16x128xf32>
    %59 = vector.extract_strided_slice %51 {offsets = [0, 5, 0], sizes = [5, 16, 128], strides = [1, 1, 1]} : vector<5x32x128xf32> to vector<5x16x128xf32>
    %cst_11 = arith.constant 0.0360007733 : f32
    %60 = vector.broadcast %cst_11 : f32 to vector<5x16x128xf32>
    %61 = arith.mulf %60, %59 : vector<5x16x128xf32>
    %62 = arith.addf %58, %61 : vector<5x16x128xf32>
    %63 = vector.extract_strided_slice %51 {offsets = [0, 6, 0], sizes = [5, 16, 128], strides = [1, 1, 1]} : vector<5x32x128xf32> to vector<5x16x128xf32>
    %cst_12 = arith.constant 0.109360687 : f32
    %64 = vector.broadcast %cst_12 : f32 to vector<5x16x128xf32>
    %65 = arith.mulf %64, %63 : vector<5x16x128xf32>
    %66 = arith.addf %62, %65 : vector<5x16x128xf32>
    %67 = vector.extract_strided_slice %51 {offsets = [0, 7, 0], sizes = [5, 16, 128], strides = [1, 1, 1]} : vector<5x32x128xf32> to vector<5x16x128xf32>
    %cst_13 = arith.constant 0.213005543 : f32
    %68 = vector.broadcast %cst_13 : f32 to vector<5x16x128xf32>
    %69 = arith.mulf %68, %67 : vector<5x16x128xf32>
    %70 = arith.addf %66, %69 : vector<5x16x128xf32>
    %71 = vector.extract_strided_slice %51 {offsets = [0, 8, 0], sizes = [5, 16, 128], strides = [1, 1, 1]} : vector<5x32x128xf32> to vector<5x16x128xf32>
    %cst_14 = arith.constant 0.266011715 : f32
    %72 = vector.broadcast %cst_14 : f32 to vector<5x16x128xf32>
    %73 = arith.mulf %72, %71 : vector<5x16x128xf32>
    %74 = arith.addf %70, %73 : vector<5x16x128xf32>
    %75 = vector.extract_strided_slice %51 {offsets = [0, 9, 0], sizes = [5, 16, 128], strides = [1, 1, 1]} : vector<5x32x128xf32> to vector<5x16x128xf32>
    %cst_15 = arith.constant 0.213005543 : f32
    %76 = vector.broadcast %cst_15 : f32 to vector<5x16x128xf32>
    %77 = arith.mulf %76, %75 : vector<5x16x128xf32>
    %78 = arith.addf %74, %77 : vector<5x16x128xf32>
    %79 = vector.extract_strided_slice %51 {offsets = [0, 10, 0], sizes = [5, 16, 128], strides = [1, 1, 1]} : vector<5x32x128xf32> to vector<5x16x128xf32>
    %cst_16 = arith.constant 0.109360687 : f32
    %80 = vector.broadcast %cst_16 : f32 to vector<5x16x128xf32>
    %81 = arith.mulf %80, %79 : vector<5x16x128xf32>
    %82 = arith.addf %78, %81 : vector<5x16x128xf32>
    %83 = vector.extract_strided_slice %51 {offsets = [0, 11, 0], sizes = [5, 16, 128], strides = [1, 1, 1]} : vector<5x32x128xf32> to vector<5x16x128xf32>
    %cst_17 = arith.constant 0.0360007733 : f32
    %84 = vector.broadcast %cst_17 : f32 to vector<5x16x128xf32>
    %85 = arith.mulf %84, %83 : vector<5x16x128xf32>
    %86 = arith.addf %82, %85 : vector<5x16x128xf32>
    %87 = vector.extract_strided_slice %51 {offsets = [0, 12, 0], sizes = [5, 16, 128], strides = [1, 1, 1]} : vector<5x32x128xf32> to vector<5x16x128xf32>
    %cst_18 = arith.constant 0.00759875821 : f32
    %88 = vector.broadcast %cst_18 : f32 to vector<5x16x128xf32>
    %89 = arith.mulf %88, %87 : vector<5x16x128xf32>
    %90 = arith.addf %86, %89 : vector<5x16x128xf32>
    %91 = vector.extract_strided_slice %51 {offsets = [0, 13, 0], sizes = [5, 16, 128], strides = [1, 1, 1]} : vector<5x32x128xf32> to vector<5x16x128xf32>
    %cst_19 = arith.constant 0.00102838012 : f32
    %92 = vector.broadcast %cst_19 : f32 to vector<5x16x128xf32>
    %93 = arith.mulf %92, %91 : vector<5x16x128xf32>
    %94 = arith.addf %90, %93 : vector<5x16x128xf32>
    %95 = vector.extract_strided_slice %94 {offsets = [0, 0, 0], sizes = [1, 16, 128], strides = [1, 1, 1]} : vector<5x16x128xf32> to vector<1x16x128xf32>
    %96 = vector.extract_strided_slice %94 {offsets = [1, 0, 0], sizes = [1, 16, 128], strides = [1, 1, 1]} : vector<5x16x128xf32> to vector<1x16x128xf32>
    %97 = vector.extract_strided_slice %94 {offsets = [2, 0, 0], sizes = [1, 16, 128], strides = [1, 1, 1]} : vector<5x16x128xf32> to vector<1x16x128xf32>
    %98 = vector.extract_strided_slice %94 {offsets = [3, 0, 0], sizes = [1, 16, 128], strides = [1, 1, 1]} : vector<5x16x128xf32> to vector<1x16x128xf32>
    %99 = vector.extract_strided_slice %94 {offsets = [4, 0, 0], sizes = [1, 16, 128], strides = [1, 1, 1]} : vector<5x16x128xf32> to vector<1x16x128xf32>
    %100 = arith.mulf %95, %95 : vector<1x16x128xf32>
    %101 = arith.mulf %96, %96 : vector<1x16x128xf32>
    %102 = arith.mulf %95, %96 : vector<1x16x128xf32>
    %103 = arith.subf %97, %100 : vector<1x16x128xf32>
    %cst_20 = arith.constant 0.000000e+00 : f32
    %104 = vector.broadcast %cst_20 : f32 to vector<1x16x128xf32>
    %105 = arith.maximumf %103, %104 : vector<1x16x128xf32>
    %106 = arith.subf %98, %101 : vector<1x16x128xf32>
    %cst_21 = arith.constant 0.000000e+00 : f32
    %107 = vector.broadcast %cst_21 : f32 to vector<1x16x128xf32>
    %108 = arith.maximumf %106, %107 : vector<1x16x128xf32>
    %109 = arith.subf %99, %102 : vector<1x16x128xf32>
    %cst_22 = arith.constant 2.000000e+00 : f32
    %110 = vector.broadcast %cst_22 : f32 to vector<1x16x128xf32>
    %111 = arith.mulf %110, %102 : vector<1x16x128xf32>
    %cst_23 = arith.constant 9.99999974E-5 : f32
    %112 = vector.broadcast %cst_23 : f32 to vector<1x16x128xf32>
    %113 = arith.addf %111, %112 : vector<1x16x128xf32>
    %cst_24 = arith.constant 2.000000e+00 : f32
    %114 = vector.broadcast %cst_24 : f32 to vector<1x16x128xf32>
    %115 = arith.mulf %114, %109 : vector<1x16x128xf32>
    %cst_25 = arith.constant 8.99999984E-4 : f32
    %116 = vector.broadcast %cst_25 : f32 to vector<1x16x128xf32>
    %117 = arith.addf %115, %116 : vector<1x16x128xf32>
    %118 = arith.mulf %113, %117 : vector<1x16x128xf32>
    %119 = arith.addf %100, %101 : vector<1x16x128xf32>
    %cst_26 = arith.constant 9.99999974E-5 : f32
    %120 = vector.broadcast %cst_26 : f32 to vector<1x16x128xf32>
    %121 = arith.addf %119, %120 : vector<1x16x128xf32>
    %122 = arith.addf %105, %108 : vector<1x16x128xf32>
    %cst_27 = arith.constant 8.99999984E-4 : f32
    %123 = vector.broadcast %cst_27 : f32 to vector<1x16x128xf32>
    %124 = arith.addf %122, %123 : vector<1x16x128xf32>
    %125 = arith.mulf %121, %124 : vector<1x16x128xf32>
    %126 = tpu.reciprocal %125 {approx = true} : vector<1x16x128xf32> -> vector<1x16x128xf32>
    %127 = arith.mulf %125, %126 : vector<1x16x128xf32>
    %cst_28 = arith.constant 2.000000e+00 : f32
    %128 = vector.broadcast %cst_28 : f32 to vector<1x16x128xf32>
    %129 = arith.subf %128, %127 : vector<1x16x128xf32>
    %130 = arith.mulf %126, %129 : vector<1x16x128xf32>
    %131 = arith.mulf %118, %130 : vector<1x16x128xf32>
    %c0_29 = arith.constant 0 : index
    %c0_30 = arith.constant 0 : index
    %c0_31 = arith.constant 0 : index
    %132 = vector.load %arg7[%c0_29, %c0_30, %c0_31] : memref<1x16x128xf32, #tpu.memory_space<vmem>>, vector<1x16x128xf32>
    %c0_32 = arith.constant 0 : index
    %c0_33 = arith.constant 0 : index
    %c0_34 = arith.constant 0 : index
    %133 = vector.load %arg5[%c0_32, %c0_33, %c0_34] : memref<1x1x128xf32, #tpu.memory_space<vmem>>, vector<1x1x128xf32>
    %134 = vector.broadcast %133 : vector<1x1x128xf32> to vector<1x16x128xf32>
    %135 = arith.mulf %131, %134 : vector<1x16x128xf32>
    %136 = arith.addf %132, %135 : vector<1x16x128xf32>
    %c0_35 = arith.constant 0 : index
    %c0_36 = arith.constant 0 : index
    %c0_37 = arith.constant 0 : index
    %137 = vector.load %arg7[%c0_35, %c0_36, %c0_37] : memref<1x16x128xf32, #tpu.memory_space<vmem>>, vector<1x16x128xf32>
    tpu.vector_store %arg7[%c0_35, %c0_36, %c0_37], %136 {strides = array<i32>} : memref<1x16x128xf32, #tpu.memory_space<vmem>>, vector<1x16x128xf32>,
    %c0_i32_38 = arith.constant 0 : i32
    %138 = arith.cmpi eq, %arg1, %c0_i32_38 : i32
    %139 = arith.extui %138 : i1 to i32
    %c0_i32_39 = arith.constant 0 : i32
    %140 = arith.cmpi ne, %139, %c0_i32_39 : i32
    scf.if %140 {
      %c0_40 = arith.constant 0 : index
      %c0_41 = arith.constant 0 : index
      %c0_42 = arith.constant 0 : index
      %141 = vector.load %arg7[%c0_40, %c0_41, %c0_42] : memref<1x16x128xf32, #tpu.memory_space<vmem>>, vector<1x16x128xf32>
      %cst_43 = arith.constant dense<0.000000e+00> : vector<128xf32>
      %142 = vector.multi_reduction <add>, %141, %cst_43 [0, 1] : vector<1x16x128xf32> to vector<128xf32>
      %143 = vector.shape_cast %142 : vector<128xf32> to vector<1x1x128xf32>
      %c0_44 = arith.constant 0 : index
      %c0_45 = arith.constant 0 : index
      %c0_46 = arith.constant 0 : index
      %144 = vector.load %arg6[%c0_44, %c0_45, %c0_46] : memref<1x1x128xf32, #tpu.memory_space<vmem>>, vector<1x1x128xf32>
      tpu.vector_store %arg6[%c0_44, %c0_45, %c0_46], %143 {strides = array<i32>} : memref<1x1x128xf32, #tpu.memory_space<vmem>>, vector<1x1x128xf32>,
    } else {
    }
    return
  }
  func.func @transform_0(%arg0: i32, %arg1: i32) -> (i32, i32) {
    %c0_i32 = arith.constant 0 : i32
    %c0_i32_0 = arith.constant 0 : i32
    %c0_i32_1 = arith.constant 0 : i32
    return %c0_i32, %c0_i32_0 : i32, i32
  }
  func.func @transform_1(%arg0: i32, %arg1: i32) -> (i32, i32, i32) {
    %c1_i32 = arith.constant 1 : i32
    %0 = arith.muli %arg0, %c1_i32 : i32
    %1 = arith.addi %0, %arg1 : i32
    %c0_i32 = arith.constant 0 : i32
    %c0_i32_0 = arith.constant 0 : i32
    %c0_i32_1 = arith.constant 0 : i32
    return %1, %c0_i32, %c0_i32_0 : i32, i32, i32
  }
  func.func @transform_2(%arg0: i32, %arg1: i32) -> (i32, i32, i32) {
    %c1_i32 = arith.constant 1 : i32
    %0 = arith.muli %arg0, %c1_i32 : i32
    %1 = arith.addi %0, %arg1 : i32
    %c0_i32 = arith.constant 0 : i32
    %c0_i32_0 = arith.constant 0 : i32
    %c0_i32_1 = arith.constant 0 : i32
    return %1, %c0_i32, %c0_i32_0 : i32, i32, i32
  }
  func.func @transform_3(%arg0: i32, %arg1: i32) -> (i32, i32, i32) {
    %c1_i32 = arith.constant 1 : i32
    %0 = arith.muli %arg0, %c1_i32 : i32
    %1 = arith.addi %0, %arg1 : i32
    %c0_i32 = arith.constant 0 : i32
    %c0_i32_0 = arith.constant 0 : i32
    %c0_i32_1 = arith.constant 0 : i32
    return %1, %c0_i32, %c0_i32_0 : i32, i32, i32
  }
  func.func @transform_4(%arg0: i32, %arg1: i32) -> (i32, i32, i32) {
    %c0_i32 = arith.constant 0 : i32
    %c0_i32_0 = arith.constant 0 : i32
    %c0_i32_1 = arith.constant 0 : i32
    return %arg0, %c0_i32, %c0_i32_0 : i32, i32, i32
  }
}

</mosaic_0001>

<bundles_post_ra>
// kernel: tpu_custom_call.1
= control target key start
LH: loop header
LB: loop body
LE: loop exit
PB: predicated region body
PF: predicated region fallthrough
CT: control target
= control target key end

     0   :  { %9 = vsyncpa [#allocation4], 0  ;;  %s1890_s0 = inlined_call_operand.hbm [shape: f32[128,128], index: 0, kind: input, shape index: {}]   ;;  %s1891_s1 = inlined_call_operand.hbm [shape: f32[8,16,16], index: 1, kind: input, shape index: {}]   ;;  %s1892_s2 = inlined_call_operand.hbm [shape: f32[8,16,16], index: 2, kind: input, shape index: {}]   ;;  %s1893_s3 = inlined_call_operand.vmem [shape: f32[1,1,128], index: 3, kind: input, shape index: {}]   ;;  %s1894_s4 = inlined_call_operand.hbm [shape: f32[1,1,128], index: 4, kind: output, shape index: {}]  }
   0x1   :  { %10 = vsyncpa [#allocation7], 0 }
   0x2   :  { %11 = vsyncpa [#allocation5], 0  ;;  %s1338_s15 = smov [#allocation6]   ;;  %s1339_s17 = smov [#allocation3]  }
   0x3   :  { %s34_s16 = sshll.u32 %s1338_s15, 4  ;;  %s17_s18 = sshll.u32 %s1339_s17, 4  ;;  %s35_s16 = int_to_ptr.vmem [resolvable:$true] %s34_s16  ;;  %s1377_s18 = int_to_ptr.vmem [resolvable:$true] %s17_s18 }
   0x4   :  { %s1244_s21 = scalar_lea.hbm %s1891_s1, 2048 }
   0x5   :  { %p1245_p0 = scmp.ne.s32.totalorder %s1891_s1, %s1244_s21  ;;  %p1248_p1 = scmp.lt.u32.totalorder %s1244_s21, %s1891_s1 }
   0x7   :  { %p1250_p2 = pnand %p1248_p1, %p1245_p0 }
   0x9   :  { %1253 = shalt.err (!%p1250_p2)
}
   0xa   :  { %s1254_s26 = scalar_lea.vmem %s35_s16, 2048  ;;  %p1259_p4 = scmp.lt.s32.totalorder %s35_s16, %s35_s16 }
   0xb   :  { %p1255_p3 = scmp.ne.s32.totalorder %s35_s16, %s1254_s26  ;;  %p1260_p5 = scmp.lt.s32.totalorder %s1254_s26, %s1254_s26 }
   0xd   :  { %p1261_p6 = por %p1260_p5, %p1259_p4 }
   0xf   :  { %p1262_p7 = pnand %p1261_p6, %p1255_p3 }
  0x11   :  { %1265 = shalt.err (!%p1262_p7)
}
  0x12   :  { %s1340_s27 = smov 128   ;;  %s1341_s28 = smov 8  }
  0x13   :  { %40 = dma.hbm_to_vmem [thread:$0]  %s1891_s1, 2048, %s35_s16, [#allocation7], %s1340_s27, %s1340_s27, %s1341_s28  }
  0x14   :  { %s1266_s7 = scalar_lea.hbm %s1890_s0, 2048 }
  0x15   :  { %p1267_p8 = scmp.ne.s32.totalorder %s1890_s0, %s1266_s7  ;;  %p1270_p9 = scmp.lt.u32.totalorder %s1266_s7, %s1890_s0 }
  0x17   :  { %p1272_p10 = pnand %p1270_p9, %p1267_p8 }
  0x19   :  { %1275 = shalt.err (!%p1272_p10)
}
  0x1a   :  { %s1276_s12 = scalar_lea.vmem %s1377_s18, 2048  ;;  %p1281_p12 = scmp.lt.s32.totalorder %s1377_s18, %s1377_s18 }
  0x1b   :  { %p1277_p11 = scmp.ne.s32.totalorder %s1377_s18, %s1276_s12  ;;  %p1282_p13 = scmp.lt.s32.totalorder %s1276_s12, %s1276_s12 }
  0x1d   :  { %p1283_p0 = por %p1282_p13, %p1281_p12 }
  0x1f   :  { %p1284_p1 = pnand %p1283_p0, %p1277_p11 }
  0x21   :  { %1287 = shalt.err (!%p1284_p1)
}
  0x22   :  { %23 = dma.hbm_to_vmem [thread:$0]  %s1890_s0, 2048, %s1377_s18, [#allocation4], %s1340_s27, %s1340_s27, %s1341_s28  }
  0x23   :  { %s1342_s14 = smov [#allocation8]   ;;  %s1288_s19 = scalar_lea.hbm %s1892_s2, 2048 }
  0x24   :  { %s51_s15 = sshll.u32 %s1342_s14, 4  ;;  %p1289_p2 = scmp.ne.s32.totalorder %s1892_s2, %s1288_s19  ;;  %s52_s15 = int_to_ptr.vmem [resolvable:$true] %s51_s15 }
  0x25   :  { %p1292_p3 = scmp.lt.u32.totalorder %s1288_s19, %s1892_s2 }
  0x27   :  { %p1294_p4 = pnand %p1292_p3, %p1289_p2 }
  0x29   :  { %1297 = shalt.err (!%p1294_p4)
}
  0x2a   :  { %s1298_s24 = scalar_lea.vmem %s52_s15, 2048  ;;  %p1303_p6 = scmp.lt.s32.totalorder %s52_s15, %s52_s15 }
  0x2b   :  { %p1299_p5 = scmp.ne.s32.totalorder %s52_s15, %s1298_s24  ;;  %p1304_p7 = scmp.lt.s32.totalorder %s1298_s24, %s1298_s24 }
  0x2d   :  { %p1305_p8 = por %p1304_p7, %p1303_p6 }
  0x2f   :  { %p1306_p9 = pnand %p1305_p8, %p1299_p5 }
  0x31   :  { %1309 = shalt.err (!%p1306_p9)
}
  0x32   :  { %57 = dma.hbm_to_vmem [thread:$0]  %s1892_s2, 2048, %s52_s15, [#allocation7], %s1340_s27, %s1340_s27, %s1341_s28  }
  0x33   :  { %1332 = dma.done.wait [#allocation4], 2048  }
  0x34   :  { %1333 = vsyncadd [#allocation4], 4294965248 }
  0x35   :  { %1334 = dma.done.wait [#allocation7], 4096  }
  0x36   :  { %1335 = vsyncadd [#allocation7], 4294963200  ;;  %v97_v0 = vld [vmem:[#allocation6 + $0x20] sm:$0xff]  ;;  %v95_v1 = vld [vmem:[#allocation6 + $0x10] sm:$0xff]  ;;  %s1343_s25 = smov 32   ;;  %s1344_s26 = smov 16  }
  0x37   :  { %119 = vrot.lane.b32.xlu1 %v97_v0, %s1343_s25  ;;  %111 = vrot.lane.b32.xlu0 %v95_v1, %s1344_s26  ;;  %v98_v2 = vld [vmem:[#allocation6 + $0x28] sm:$0xff]  ;;  %v96_v3 = vld [vmem:[#allocation6 + $0x18] sm:$0xff]  ;;  %v99_v5 = vld [vmem:[#allocation6 + $0x30] sm:$0xff]  ;;  %s1345_s2 = smov 48   ;;  %s1346_s27 = smov 64   ;;  %vm165_vm0 = vcmask 130048  }
  0x38   :  { %v100_v4 = vld [vmem:[#allocation6 + $0x38] sm:$0xff]  ;;  %v102_v6 = vld [vmem:[#allocation6 + $0x48] sm:$0xff]  ;;  %v101_v7 = vld [vmem:[#allocation6 + $0x40] sm:$0xff]  ;;  %s1347_s28 = smov 80   ;;  %s1348_s29 = smov 96   ;;  %vm168_vm1 = vcmask 261120  }
  0x39   :  { %v278_v8 = vld [vmem:[#allocation3] sm:$0xff]  ;;  %v279_v9 = vld [vmem:[#allocation3 + $0x8] sm:$0xff]  ;;  %v280_v10 = vld [vmem:[#allocation3 + $0x10] sm:$0xff]  ;;  %s1349_s30 = smov 112   ;;  %vm171_vm2 = vcmask 392192   ;;  %vm174_vm3 = vcmask 523264  }
  0x3a   :  { %v1176_v11 = vpack.c.bf16 %v279_v9, %v278_v8  ;;  %v281_v12 = vld [vmem:[#allocation3 + $0x18] sm:$0xff]  ;;  %v282_v14 = vld [vmem:[#allocation3 + $0x20] sm:$0xff]  ;;  %v283_v15 = vld [vmem:[#allocation3 + $0x28] sm:$0xff]  ;;  %vm177_vm4 = vcmask 654336   ;;  %vm180_vm5 = vcmask 785408   ;;  %vm183_vm6 = vcmask 916480  }
  0x3b   :  { %121 = vrot.lane.b32.xlu1 %v98_v2, %s1343_s25  ;;  %113 = vrot.lane.b32.xlu0 %v96_v3, %s1344_s26  ;;  %v1180_v13 = vpack.c.bf16 %v281_v12, %v280_v10  ;;  %v188_v16 = vld [vmem:[#allocation8 + $0x10] sm:$0xff]  ;;  %v1184_v18 = vpack.c.bf16 %v283_v15, %v282_v14  ;;  %v285_v20 = vld [vmem:[#allocation3 + $0x38] sm:$0xff]  ;;  %v105_v21 = vld [vmem:[#allocation6 + $0x60] sm:$0xff]  ;;  %vm440_vm7 = vcmask 1046528   ;;  %vm512_vm8 = vcmask 1045504   ;;  %s1351_s7 = smov [#allocation9]  }
  0x3c   :  { %v103_v17 = vld [vmem:[#allocation6 + $0x50] sm:$0xff]  ;;  %1177 = vmatprep.subr.bf16.mxu0 %v1176_v11  ;;  %1208 = vmatprep.subr.bf16.mxu1 %v1176_v11  ;;  %v104_v22 = vld [vmem:[#allocation6 + $0x58] sm:$0xff]  ;;  %v286_v24 = vld [vmem:[#allocation3 + $0x40] sm:$0xff]  ;;  %vm774_vm9 = vcmask 1041408   ;;  %vm584_vm10 = vcmask 1044480   ;;  %vm656_vm11 = vcmask 1043456  }
  0x3d   :  { %1179 = vmatpush3.bf16.msra.mxu0 %v1176_v11  ;;  %1216 = vmatpush3.bf16.msra.mxu1 %v1176_v11  ;;  %v284_v19 = vld [vmem:[#allocation3 + $0x30] sm:$0xff]  ;;  %v287_v25 = vld [vmem:[#allocation3 + $0x48] sm:$0xff]  ;;  %v190_v26 = vld [vmem:[#allocation8 + $0x20] sm:$0xff]  ;;  %vm728_vm12 = vcmask 1042432   ;;  %vm826_vm13 = vcmask 1040384   ;;  %s1089_s8 = sshll.u32 %s1351_s7, 4  ;;  %s1090_s8 = int_to_ptr.vmem [resolvable:$true] %s1089_s8 }
  0x3e   :  { %1181 = vmatprep.subr.bf16.mxu0 %v1180_v13  ;;  %1209 = vmatprep.subr.bf16.mxu1 %v1180_v13  ;;  %v1188_v23 = vpack.c.bf16 %v285_v20, %v284_v19  ;;  %v189_v27 = vld [vmem:[#allocation8 + $0x18] sm:$0xff]  ;;  %v1192_v28 = vpack.c.bf16 %v287_v25, %v286_v24  ;;  %v288_v29 = vld [vmem:[#allocation3 + $0x50] sm:$0xff]  ;;  %v106_v32 = vld [vmem:[#allocation6 + $0x68] sm:$0xff]  ;;  %s1314_s9 = scalar_lea.vmem %s1090_s8, 32  ;;  %p1315_p11 = scmp.lt.s32.totalorder %s1090_s8, %s1090_s8 }
  0x3f   :  { %129 = vrot.lane.b32.xlu1 %v100_v4, %s1345_s2  ;;  %127 = vrot.lane.b32.xlu0 %v99_v5, %s1345_s2  ;;  %v289_v30 = vld [vmem:[#allocation3 + $0x58] sm:$0xff]  ;;  %v107_v31 = vld [vmem:[#allocation6 + $0x70] sm:$0xff]  ;;  %v290_v34 = vld [vmem:[#allocation3 + $0x60] sm:$0xff] }
  0x40   :  { %v1196_v33 = vpack.c.bf16 %v289_v30, %v288_v29  ;;  %v291_v35 = vld [vmem:[#allocation3 + $0x68] sm:$0xff]  ;;  %v192_v36 = vld [vmem:[#allocation8 + $0x30] sm:$0xff]  ;;  %v293_v40 = vld [vmem:[#allocation3 + $0x78] sm:$0xff] }
  0x41   :  { %1183 = vmatpush3.bf16.msra.mxu0 %v1180_v13  ;;  %1217 = vmatpush3.bf16.msra.mxu1 %v1180_v13  ;;  %v191_v37 = vld [vmem:[#allocation8 + $0x28] sm:$0xff]  ;;  %v1200_v38 = vpack.c.bf16 %v291_v35, %v290_v34  ;;  %v292_v39 = vld [vmem:[#allocation3 + $0x70] sm:$0xff]  ;;  %v193_v41 = vld [vmem:[#allocation8 + $0x38] sm:$0xff] }
  0x42   :  { %1185 = vmatprep.subr.bf16.mxu0 %v1184_v18  ;;  %1210 = vmatprep.subr.bf16.mxu1 %v1184_v18  ;;  %v108_v42 = vld [vmem:[#allocation6 + $0x78] sm:$0xff]  ;;  %v1204_v43 = vpack.c.bf16 %v293_v40, %v292_v39  ;;  %v195_v44 = vld [vmem:[#allocation8 + $0x48] sm:$0xff]  ;;  %v194_v45 = vld [vmem:[#allocation8 + $0x40] sm:$0xff] }
  0x43   :  { %137 = vrot.lane.b32.xlu1 %v102_v6, %s1346_s27  ;;  %135 = vrot.lane.b32.xlu0 %v101_v7, %s1346_s27  ;;  %v197_v46 = vld [vmem:[#allocation8 + $0x58] sm:$0xff]  ;;  %v196_v47 = vld [vmem:[#allocation8 + $0x50] sm:$0xff]  ;;  %v199_v48 = vld [vmem:[#allocation8 + $0x68] sm:$0xff] }
  0x44   :  { %v198_v49 = vld [vmem:[#allocation8 + $0x60] sm:$0xff]  ;;  %v201_v50 = vld [vmem:[#allocation8 + $0x78] sm:$0xff]  ;;  %v200_v51 = vld [vmem:[#allocation8 + $0x70] sm:$0xff] }
  0x45   :  { %1187 = vmatpush3.bf16.msra.mxu0 %v1184_v18  ;;  %1218 = vmatpush3.bf16.msra.mxu1 %v1184_v18  ;;  %v93_v62 = vld [vmem:[#allocation6] sm:$0xff]  ;;  %v94_v6 = vld [vmem:[#allocation6 + $0x8] sm:$0xff] }
  0x46   :  { %1189 = vmatprep.subr.bf16.mxu0 %v1188_v23  ;;  %1211 = vmatprep.subr.bf16.mxu1 %v1188_v23 }
  0x47   :  { %204 = vrot.lane.b32.xlu1 %v188_v16, %s1344_s26  ;;  %143 = vrot.lane.b32.xlu0 %v103_v17, %s1347_s28 }
  0x49   :  { %1191 = vmatpush3.bf16.msra.mxu0 %v1188_v23  ;;  %1219 = vmatpush3.bf16.msra.mxu1 %v1188_v23 }
  0x4a   :  { %1193 = vmatprep.subr.bf16.mxu0 %v1192_v28  ;;  %1212 = vmatprep.subr.bf16.mxu1 %v1192_v28 }
  0x4b   :  { %151 = vrot.lane.b32.xlu1 %v105_v21, %s1348_s29  ;;  %145 = vrot.lane.b32.xlu0 %v104_v22, %s1347_s28 }
  0x4d   :  { %1195 = vmatpush3.bf16.msra.mxu0 %v1192_v28  ;;  %1220 = vmatpush3.bf16.msra.mxu1 %v1192_v28 }
  0x4e   :  { %1197 = vmatprep.subr.bf16.mxu0 %v1196_v33  ;;  %1213 = vmatprep.subr.bf16.mxu1 %v1196_v33 }
  0x4f   :  { %212 = vrot.lane.b32.xlu1 %v190_v26, %s1343_s25  ;;  %206 = vrot.lane.b32.xlu0 %v189_v27, %s1344_s26  ;;  %v186_v26 = vld [vmem:[#allocation8] sm:$0xff]  ;;  %v187_v27 = vld [vmem:[#allocation8 + $0x8] sm:$0xff] }
  0x51   :  { %1199 = vmatpush3.bf16.msra.mxu0 %v1196_v33  ;;  %1221 = vmatpush3.bf16.msra.mxu1 %v1196_v33 }
  0x52   :  { %1201 = vmatprep.subr.bf16.mxu0 %v1200_v38  ;;  %1214 = vmatprep.subr.bf16.mxu1 %v1200_v38 }
  0x53   :  { %159 = vrot.lane.b32.xlu1 %v107_v31, %s1349_s30  ;;  %153 = vrot.lane.b32.xlu0 %v106_v32, %s1348_s29 }
  0x55   :  { %1203 = vmatpush3.bf16.msra.mxu0 %v1200_v38  ;;  %1222 = vmatpush3.bf16.msra.mxu1 %v1200_v38 }
  0x56   :  { %1205 = vmatprep.subr.bf16.mxu0 %v1204_v43  ;;  %1215 = vmatprep.subr.bf16.mxu1 %v1204_v43 }
  0x57   :  { %220 = vrot.lane.b32.xlu1 %v192_v36, %s1345_s2  ;;  %214 = vrot.lane.b32.xlu0 %v191_v37, %s1343_s25 }
  0x59   :  { %1207 = vmatpush3.bf16.msra.mxu0 %v1204_v43  ;;  %1223 = vmatpush3.bf16.msra.mxu1 %v1204_v43 }
  0x5b   :  { %222 = vrot.lane.b32.xlu1 %v193_v41, %s1345_s2  ;;  %161 = vrot.lane.b32.xlu0 %v108_v42, %s1349_s30 }
  0x5f   :  { %230 = vrot.lane.b32.xlu1 %v195_v44, %s1346_s27  ;;  %228 = vrot.lane.b32.xlu0 %v194_v45, %s1346_s27 }
  0x63   :  { %238 = vrot.lane.b32.xlu1 %v197_v46, %s1347_s28  ;;  %236 = vrot.lane.b32.xlu0 %v196_v47, %s1347_s28 }
  0x67   :  { %246 = vrot.lane.b32.xlu1 %v199_v48, %s1348_s29  ;;  %244 = vrot.lane.b32.xlu0 %v198_v49, %s1348_s29 }
  0x6b   :  { %254 = vrot.lane.b32.xlu1 %v201_v50, %s1349_s30  ;;  %252 = vrot.lane.b32.xlu0 %v200_v51, %s1349_s30 }
  0xa9   :  { %v120_v52 = vpop.permute.xlu1 %119  ;;  %v112_v53 = vpop.permute.xlu0 %111 }
  0xaa   :  { %v166_v1 = vsel %vm165_vm0, %v93_v62, %v112_v53 }
  0xab   :  { %v169_v2 = vsel %vm168_vm1, %v166_v1, %v120_v52 }
  0xad   :  { %v122_v54 = vpop.permute.xlu1 %121  ;;  %v114_v55 = vpop.permute.xlu0 %113 }
  0xae   :  { %v167_v12 = vsel %vm165_vm0, %v94_v6, %v114_v55 }
  0xaf   :  { %v170_v14 = vsel %vm168_vm1, %v167_v12, %v122_v54  ;;  %v1350_v54 = vmov 0.0  }
  0xb0   :  { %v1485_v55 = vrot.slane %v1350_v54, 1 }
  0xb1   :  { %v130_v56 = vpop.permute.xlu1 %129  ;;  %v128_v57 = vpop.permute.xlu0 %127 }
  0xb2   :  { %v172_v5 = vsel %vm171_vm2, %v169_v2, %v128_v57  ;;  %v173_v17 = vsel %vm171_vm2, %v170_v14, %v130_v56  ;;  %v1487_v56 = vrot.slane %v1350_v54, 2 }
  0xb5   :  { %v138_v58 = vpop.permute.xlu1 %137  ;;  %v136_v59 = vpop.permute.xlu0 %135 }
  0xb6   :  { %v175_v7 = vsel %vm174_vm3, %v172_v5, %v136_v59  ;;  %v176_v18 = vsel %vm174_vm3, %v173_v17, %v138_v58  ;;  %v1489_v58 = vrot.slane %v1350_v54, 6  ;;  %v1491_v59 = vrot.slane %v1350_v54, 7 }
  0xb7   :  { %v1501_v5 = vrot.slane %v1350_v54, 4 }
  0xb9   :  { %v205_v60 = vpop.permute.xlu1 %204  ;;  %v144_v61 = vpop.permute.xlu0 %143 }
  0xba   :  { %v178_v8 = vsel %vm177_vm4, %v175_v7, %v144_v61  ;;  %v258_v30 = vsel %vm165_vm0, %v186_v26, %v205_v60  ;;  %v1493_v60 = vrot.slane %v1350_v54, 3 }
  0xbd   :  { %v152_v63 = vpop.permute.xlu1 %151  ;;  %v146_v0 = vpop.permute.xlu0 %145 }
  0xbe   :  { %v181_v9 = vsel %vm180_vm5, %v178_v8, %v152_v63  ;;  %v179_v19 = vsel %vm177_vm4, %v176_v18, %v146_v0 }
  0xc1   :  { %v213_v3 = vpop.permute.xlu1 %212  ;;  %v207_v4 = vpop.permute.xlu0 %206 }
  0xc2   :  { %v259_v31 = vsel %vm165_vm0, %v187_v27, %v207_v4  ;;  %v260_v32 = vsel %vm168_vm1, %v258_v30, %v213_v3 }
  0xc5   :  { %v160_v10 = vpop.permute.xlu1 %159  ;;  %v154_v11 = vpop.permute.xlu0 %153 }
  0xc6   :  { %v184_v13 = vsel %vm183_vm6, %v181_v9, %v160_v10  ;;  %v182_v20 = vsel %vm180_vm5, %v179_v19, %v154_v11 }
  0xc7   :  { %1161 = vmatprep.mubr.f32.mxu0 %v184_v13  ;;  %v272_v48 = vmul.f32 %v184_v13, %v184_v13 }
  0xc9   :  { %v221_v15 = vpop.permute.xlu1 %220  ;;  %v215_v16 = vpop.permute.xlu0 %214 }
  0xca   :  { %v261_v33 = vsel %vm168_vm1, %v259_v31, %v215_v16  ;;  %v262_v36 = vsel %vm171_vm2, %v260_v32, %v221_v15 }
  0xcd   :  { %v223_v21 = vpop.permute.xlu1 %222  ;;  %v162_v22 = vpop.permute.xlu0 %161 }
  0xce   :  { %v185_v23 = vsel %vm183_vm6, %v182_v20, %v162_v22  ;;  %v263_v37 = vsel %vm171_vm2, %v261_v33, %v223_v21 }
  0xcf   :  { %1162 = vmatmul.mubr.f32.vlgmr.msra.gmra.mrb[0].mxu0 %v185_v23  ;;  %v273_v52 = vmul.f32 %v185_v23, %v185_v23 }
  0xd1   :  { %v231_v24 = vpop.permute.xlu1 %230  ;;  %v229_v25 = vpop.permute.xlu0 %228 }
  0xd2   :  { %v265_v38 = vsel %vm174_vm3, %v263_v37, %v231_v24  ;;  %v264_v39 = vsel %vm174_vm3, %v262_v36, %v229_v25 }
  0xd5   :  { %v239_v28 = vpop.permute.xlu1 %238  ;;  %v237_v29 = vpop.permute.xlu0 %236 }
  0xd6   :  { %v267_v40 = vsel %vm177_vm4, %v265_v38, %v239_v28  ;;  %v266_v41 = vsel %vm177_vm4, %v264_v39, %v237_v29 }
  0xd9   :  { %v247_v34 = vpop.permute.xlu1 %246  ;;  %v245_v35 = vpop.permute.xlu0 %244 }
  0xda   :  { %v269_v42 = vsel %vm180_vm5, %v267_v40, %v247_v34  ;;  %v268_v43 = vsel %vm180_vm5, %v266_v41, %v245_v35 }
  0xdd   :  { %v255_v44 = vpop.permute.xlu1 %254  ;;  %v253_v45 = vpop.permute.xlu0 %252 }
  0xde   :  { %v270_v46 = vsel %vm183_vm6, %v268_v43, %v253_v45  ;;  %v271_v47 = vsel %vm183_vm6, %v269_v42, %v255_v44 }
  0xdf   :  { %1164 = vmatprep.mubr.f32.mxu0 %v270_v46  ;;  %v274_v49 = vmul.f32 %v270_v46, %v270_v46  ;;  %v275_v50 = vmul.f32 %v271_v47, %v271_v47  ;;  %v276_v51 = vmul.f32 %v270_v46, %v184_v13  ;;  %v277_v53 = vmul.f32 %v271_v47, %v185_v23 }
  0xe0   :  { %1165 = vmatmul.mubr.f32.gmra.mrb[2].mxu0 %v271_v47 }
  0xe1   :  { %1167 = vmatprep.mubr.f32.mxu0 %v272_v48  ;;  %1170 = vmatprep.mubr.f32.mxu1 %v274_v49 }
  0xe2   :  { %1171 = vmatmul.mubr.f32.vlgmr.msra.gmra.mrb[0].mxu1 %v275_v50 }
  0xe3   :  { %1173 = vmatprep.mubr.f32.mxu1 %v276_v51 }
  0xe4   :  { %1168 = vmatmul.mubr.f32.gmra.mrb[4].mxu0 %v273_v52 }
  0xe6   :  { %1174 = vmatmul.mubr.f32.gmra.mrb[2].mxu1 %v277_v53 }
 0x1a2   :  { %v1163_v57 = vpop.f32.mrb[0].mxu0 }
 0x1a3   :  { %v1495_v61 = vmul.f32 0.0010283801, %v1163_v57  ;;  %v420_v62 = vmul.f32 0.007598758, %v1163_v57  ;;  %v1497_v63 = vmul.f32 0.036000773, %v1163_v57 }
 0x1a4   :  { %v565_v0 = vmul.f32 0.10936069, %v1163_v57  ;;  %v637_v1 = vmul.f32 0.21300554, %v1163_v57  ;;  %v709_v2 = vmul.f32 0.26601171, %v1163_v57 }
 0x1a5   :  { %v1499_v3 = vrot.slane %v420_v62, 1  ;;  %v360_v4 = vpop.f32.mrb[1].mxu0  ;;  %v516_v6 = vrot.slane %v1497_v63, 2  ;;  %v930_v8 = vrot.slane %v1495_v61, 2 }
 0x1a6   :  { %v588_v7 = vrot.slane %v565_v0, 3  ;;  %v660_v10 = vrot.slane %v637_v1, 4  ;;  %v730_v11 = vrot.slane %v709_v2, 5  ;;  %v776_v12 = vrot.slane %v637_v1, 6 }
 0x1a7   :  { %v479_v9 = vadd.f32 %v1499_v3, %v1495_v61  ;;  %v409_v13 = vmul.f32 0.0010283801, %v360_v4  ;;  %v419_v14 = vmul.f32 0.007598758, %v360_v4  ;;  %v1507_v15 = vmul.f32 0.036000773, %v360_v4 }
 0x1a8   :  { %v828_v17 = vrot.slane %v565_v0, 7  ;;  %v564_v18 = vmul.f32 0.10936069, %v360_v4  ;;  %v636_v19 = vmul.f32 0.21300554, %v360_v4  ;;  %v779_v33 = vsel %vm774_vm9, %v776_v12, %v1489_v58 }
 0x1a9   :  { %v551_v16 = vadd.f32 %v516_v6, %v479_v9  ;;  %v442_v20 = vrot.slane %v419_v14, 1  ;;  %v514_v21 = vrot.slane %v1507_v15, 2  ;;  %v708_v22 = vmul.f32 0.26601171, %v360_v4 }
 0x1aa   :  { %v929_v23 = vrot.slane %v409_v13, 2  ;;  %v586_v25 = vrot.slane %v564_v18, 3  ;;  %v658_v26 = vrot.slane %v636_v19, 4  ;;  %v775_v27 = vrot.slane %v636_v19, 6 }
 0x1ab   :  { %v623_v24 = vadd.f32 %v588_v7, %v551_v16  ;;  %v443_v28 = vsel %vm440_vm7, %v1485_v55, %v442_v20  ;;  %v1514_v29 = vsel %vm440_vm7, %v442_v20, %v1499_v3  ;;  %v515_v30 = vsel %vm512_vm8, %v1487_v56, %v514_v21 }
 0x1ac   :  { %v517_v31 = vsel %vm512_vm8, %v514_v21, %v516_v6  ;;  %v478_v34 = vadd.f32 %v1514_v29, %v409_v13  ;;  %v549_v35 = vadd.f32 %v515_v30, %v443_v28  ;;  %v587_v36 = vsel %vm584_vm10, %v1493_v60, %v586_v25 }
 0x1ad   :  { %v695_v32 = vadd.f32 %v660_v10, %v623_v24  ;;  %v589_v37 = vsel %vm584_vm10, %v586_v25, %v588_v7  ;;  %v661_v38 = vsel %vm656_vm11, %v658_v26, %v660_v10  ;;  %v729_v39 = vrot.slane %v708_v22, 5 }
 0x1ae   :  { %v550_v41 = vadd.f32 %v517_v31, %v478_v34  ;;  %v621_v42 = vadd.f32 %v587_v36, %v549_v35  ;;  %v777_v43 = vsel %vm774_vm9, %v775_v27, %v776_v12  ;;  %v659_v44 = vsel %vm656_vm11, %v1501_v5, %v658_v26 }
 0x1af   :  { %v761_v40 = vadd.f32 %v730_v11, %v695_v32  ;;  %v731_v45 = vsel %vm728_vm12, %v729_v39, %v730_v11  ;;  %v827_v46 = vrot.slane %v564_v18, 7  ;;  %v931_v47 = vsel %vm512_vm8, %v929_v23, %v930_v8 }
 0x1b0   :  { %v622_v49 = vadd.f32 %v589_v37, %v550_v41  ;;  %v693_v50 = vadd.f32 %v659_v44, %v621_v42  ;;  %v831_v51 = vsel %vm826_vm13, %v828_v17, %v1491_v59  ;;  %v893_v12 = vsel %vm440_vm7, %v1499_v3, %v1485_v55 }
 0x1b1   :  { %v813_v48 = vadd.f32 %v779_v33, %v761_v40  ;;  %v829_v52 = vsel %vm826_vm13, %v827_v46, %v828_v17  ;;  %v932_v17 = vsel %vm512_vm8, %v930_v8, %v1487_v56 }
 0x1b2   :  { %v694_v54 = vadd.f32 %v661_v38, %v622_v49  ;;  %v759_v57 = vadd.f32 %v729_v39, %v693_v50 }
 0x1b3   :  { %v865_v53 = vadd.f32 %v831_v51, %v813_v48  ;;  %v1166_v62 = vpop.f32.mrb[2].mxu0 }
 0x1b4   :  { %v1536_v0 = vmul.f32 0.0010283801, %v1166_v62  ;;  %v422_v1 = vmul.f32 0.007598758, %v1166_v62  ;;  %v1538_v2 = vmul.f32 0.036000773, %v1166_v62  ;;  %v760_v6 = vadd.f32 %v731_v45, %v694_v54 }
 0x1b5   :  { %v906_v4 = vadd.f32 %v865_v53, %v1485_v55  ;;  %v811_v7 = vadd.f32 %v775_v27, %v759_v57  ;;  %v1541_v9 = vmul.f32 0.10936069, %v1166_v62  ;;  %v370_v10 = vpop.f32.mrb[3].mxu0  ;;  %v1543_v11 = vpop.f32.mrb[0].mxu1  ;;  %v639_v14 = vmul.f32 0.21300554, %v1166_v62 }
 0x1b6   :  { %v1548_v13 = vrot.slane %v422_v1, 1  ;;  %v1550_v16 = vmul.f32 0.26601171, %v1166_v62  ;;  %v812_v19 = vadd.f32 %v777_v43, %v760_v6  ;;  %v1559_v21 = vpop.f32.mrb[1].mxu1  ;;  %v520_v23 = vrot.slane %v1538_v2, 2 }
 0x1b7   :  { %v1557_v18 = vadd.f32 %v906_v4, %v1487_v56  ;;  %v863_v20 = vadd.f32 %v827_v46, %v811_v7  ;;  %v1561_v22 = vpop.f32.mrb[4].mxu0  ;;  %v592_v24 = vrot.slane %v1541_v9, 3  ;;  %v781_v25 = vrot.slane %v639_v14, 6 }
 0x1b8   :  { %v482_v3 = vadd.f32 %v1548_v13, %v1536_v0  ;;  %v1567_v61 = vpop.f32.mrb[5].mxu0  ;;  %v864_v8 = vadd.f32 %v829_v52, %v812_v19  ;;  %v664_v27 = vrot.slane %v639_v14, 4  ;;  %v833_v28 = vrot.slane %v1541_v9, 7 }
 0x1b9   :  { %v878_v26 = vadd.f32 %v863_v20, %v1507_v15  ;;  %v1571_v30 = vpop.f32.mrb[2].mxu1  ;;  %v1575_v31 = vmul.f32 %v1557_v18, %v1557_v18  ;;  %v733_v33 = vrot.slane %v1550_v16, 5  ;;  %v783_v34 = vsel %vm774_vm9, %v781_v25, %v1489_v58 }
 0x1ba   :  { %v554_v32 = vadd.f32 %v520_v23, %v482_v3  ;;  %v1580_v35 = vpop.f32.mrb[3].mxu1  ;;  %v879_v36 = vadd.f32 %v864_v8, %v1497_v63  ;;  %v835_v37 = vsel %vm826_vm13, %v833_v28, %v1491_v59  ;;  %v934_v38 = vrot.slane %v1536_v0, 2 }
 0x1bb   :  { %v904_v15 = vadd.f32 %v878_v26, %v1514_v29  ;;  %v411_v40 = vmul.f32 0.0010283801, %v370_v10  ;;  %v421_v41 = vmul.f32 0.007598758, %v370_v10  ;;  %v1587_v42 = vmul.f32 0.036000773, %v370_v10 }
 0x1bc   :  { %v626_v39 = vadd.f32 %v592_v24, %v554_v32  ;;  %v905_v43 = vadd.f32 %v893_v12, %v879_v36  ;;  %v566_v45 = vmul.f32 0.10936069, %v370_v10  ;;  %v638_v46 = vmul.f32 0.21300554, %v370_v10 }
 0x1bd   :  { %v1589_v44 = vadd.f32 %v931_v47, %v904_v15  ;;  %v446_v49 = vrot.slane %v421_v41, 1  ;;  %v518_v63 = vrot.slane %v1587_v42, 2  ;;  %v710_v29 = vmul.f32 0.26601171, %v370_v10 }
 0x1be   :  { %v698_v48 = vadd.f32 %v664_v27, %v626_v39  ;;  %v1592_v50 = vadd.f32 %v932_v17, %v905_v43  ;;  %v590_v51 = vrot.slane %v566_v45, 3  ;;  %v662_v52 = vrot.slane %v638_v46, 4 }
 0x1bf   :  { %v780_v53 = vrot.slane %v638_v46, 6  ;;  %v447_v57 = vsel %vm440_vm7, %v1485_v55, %v446_v49  ;;  %v449_v47 = vsel %vm440_vm7, %v446_v49, %v1548_v13  ;;  %v519_v62 = vsel %vm512_vm8, %v1487_v56, %v518_v63 }
 0x1c0   :  { %v764_v54 = vadd.f32 %v733_v33, %v698_v48  ;;  %v481_v0 = vadd.f32 %v449_v47, %v411_v40  ;;  %v521_v1 = vsel %vm512_vm8, %v518_v63, %v520_v23  ;;  %v552_v4 = vadd.f32 %v519_v62, %v447_v57 }
 0x1c1   :  { %v591_v6 = vsel %vm584_vm10, %v1493_v60, %v590_v51  ;;  %v593_v9 = vsel %vm584_vm10, %v590_v51, %v592_v24  ;;  %v663_v10 = vsel %vm656_vm11, %v1501_v5, %v662_v52  ;;  %v665_v12 = vsel %vm656_vm11, %v662_v52, %v664_v27 }
 0x1c2   :  { %v816_v7 = vadd.f32 %v783_v34, %v764_v54  ;;  %v553_v14 = vadd.f32 %v521_v1, %v481_v0  ;;  %v624_v16 = vadd.f32 %v591_v6, %v552_v4  ;;  %v732_v17 = vrot.slane %v710_v29, 5 }
 0x1c3   :  { %v782_v19 = vsel %vm774_vm9, %v780_v53, %v781_v25  ;;  %v832_v3 = vrot.slane %v566_v45, 7  ;;  %v933_v23 = vrot.slane %v411_v40, 2  ;;  %v1609_v8 = vmul.f32 0.0010283801, %v1543_v11 }
 0x1c4   :  { %v868_v20 = vadd.f32 %v835_v37, %v816_v7  ;;  %v625_v26 = vadd.f32 %v593_v9, %v553_v14  ;;  %v696_v32 = vadd.f32 %v663_v10, %v624_v16  ;;  %v734_v24 = vsel %vm728_vm12, %v732_v17, %v733_v33 }
 0x1c5   :  { %v426_v34 = vmul.f32 0.007598758, %v1543_v11  ;;  %v834_v27 = vsel %vm826_vm13, %v832_v3, %v833_v28  ;;  %v935_v15 = vsel %vm512_vm8, %v933_v23, %v934_v38  ;;  %v1617_v25 = vmul.f32 0.036000773, %v1543_v11 }
 0x1c6   :  { %v909_v36 = vadd.f32 %v868_v20, %v1485_v55  ;;  %v697_v37 = vadd.f32 %v665_v12, %v625_v26  ;;  %v762_v39 = vadd.f32 %v732_v17, %v696_v32  ;;  %v1620_v41 = vmul.f32 0.10936069, %v1543_v11 }
 0x1c7   :  { %v456_v40 = vrot.slane %v426_v34, 1  ;;  %v894_v33 = vsel %vm440_vm7, %v1548_v13, %v1485_v55  ;;  %v1629_v28 = vmul.f32 0.21300554, %v1543_v11  ;;  %v715_v45 = vmul.f32 0.26601171, %v1543_v11 }
 0x1c8   :  { %v1626_v43 = vadd.f32 %v909_v36, %v1487_v56  ;;  %v763_v46 = vadd.f32 %v734_v24, %v697_v37  ;;  %v814_v48 = vadd.f32 %v780_v53, %v762_v39  ;;  %v528_v63 = vrot.slane %v1617_v25, 2 }
 0x1c9   :  { %v488_v49 = vadd.f32 %v456_v40, %v1609_v8  ;;  %v936_v29 = vsel %vm512_vm8, %v934_v38, %v1487_v56  ;;  %v600_v51 = vrot.slane %v1620_v41, 3  ;;  %v789_v52 = vrot.slane %v1629_v28, 6 }
 0x1ca   :  { %v1638_v13 = vmul.f32 %v1626_v43, %v1626_v43  ;;  %v815_v54 = vadd.f32 %v782_v19, %v763_v46  ;;  %v866_v57 = vadd.f32 %v832_v3, %v814_v48  ;;  %v672_v53 = vrot.slane %v1629_v28, 4 }
 0x1cb   :  { %v560_v11 = vadd.f32 %v528_v63, %v488_v49  ;;  %v739_v0 = vrot.slane %v715_v45, 5  ;;  %v791_v38 = vsel %vm774_vm9, %v789_v52, %v1489_v58  ;;  %v841_v1 = vrot.slane %v1620_v41, 7 }
 0x1cc   :  { %v1645_v62 = vadd.f32 %v1638_v13, %v1575_v31  ;;  %v867_v4 = vadd.f32 %v834_v27, %v815_v54  ;;  %v881_v6 = vadd.f32 %v866_v57, %v1587_v42  ;;  %v942_v9 = vrot.slane %v1609_v8, 2 }
 0x1cd   :  { %v632_v7 = vadd.f32 %v600_v51, %v560_v11  ;;  %v1654_v10 = vsel %vm440_vm7, %v456_v40, %v1485_v55  ;;  %v415_v12 = vmul.f32 0.0010283801, %v1559_v21  ;;  %v425_v14 = vmul.f32 0.007598758, %v1559_v21 }
 0x1ce   :  { %v1659_v16 = vmul.f32 0.036000773, %v1559_v21  ;;  %v882_v17 = vadd.f32 %v867_v4, %v1538_v2  ;;  %v907_v19 = vadd.f32 %v881_v6, %v449_v47  ;;  %v570_v42 = vmul.f32 0.10936069, %v1559_v21 }
 0x1cf   :  { %v704_v20 = vadd.f32 %v672_v53, %v632_v7  ;;  %v454_v3 = vrot.slane %v425_v14, 1  ;;  %v642_v8 = vmul.f32 0.21300554, %v1559_v21  ;;  %v714_v26 = vmul.f32 0.26601171, %v1559_v21 }
 0x1d0   :  { %v526_v23 = vrot.slane %v1659_v16, 2  ;;  %v908_v32 = vadd.f32 %v894_v33, %v882_v17  ;;  %v1666_v24 = vadd.f32 %v935_v15, %v907_v19  ;;  %v598_v36 = vrot.slane %v570_v42, 3 }
 0x1d1   :  { %v770_v34 = vadd.f32 %v739_v0, %v704_v20  ;;  %v455_v27 = vsel %vm440_vm7, %v1485_v55, %v454_v3  ;;  %v1671_v2 = vsel %vm440_vm7, %v454_v3, %v456_v40  ;;  %v843_v21 = vsel %vm826_vm13, %v841_v1, %v1491_v59 }
 0x1d2   :  { %v527_v47 = vsel %vm512_vm8, %v1487_v56, %v526_v23  ;;  %v529_v37 = vsel %vm512_vm8, %v526_v23, %v528_v63  ;;  %v1676_v39 = vadd.f32 %v936_v29, %v908_v32  ;;  %v487_v15 = vadd.f32 %v1671_v2, %v415_v12 }
 0x1d3   :  { %v822_v41 = vadd.f32 %v791_v38, %v770_v34  ;;  %v1683_v33 = vsel %vm512_vm8, %v942_v9, %v1487_v56  ;;  %v558_v28 = vadd.f32 %v527_v47, %v455_v27  ;;  %v601_v40 = vsel %vm584_vm10, %v598_v36, %v600_v51 }
 0x1d4   :  { %v670_v45 = vrot.slane %v642_v8, 4  ;;  %v559_v48 = vadd.f32 %v529_v37, %v487_v15  ;;  %v599_v49 = vsel %vm584_vm10, %v1493_v60, %v598_v36  ;;  %v738_v63 = vrot.slane %v714_v26, 5 }
 0x1d5   :  { %v874_v46 = vadd.f32 %v843_v21, %v822_v41  ;;  %v630_v29 = vadd.f32 %v599_v49, %v558_v28  ;;  %v788_v11 = vrot.slane %v642_v8, 6  ;;  %v840_v51 = vrot.slane %v570_v42, 7 }
 0x1d6   :  { %v671_v54 = vsel %vm656_vm11, %v1501_v5, %v670_v45  ;;  %v673_v57 = vsel %vm656_vm11, %v670_v45, %v672_v53  ;;  %v631_v4 = vadd.f32 %v601_v40, %v559_v48  ;;  %v740_v6 = vsel %vm728_vm12, %v738_v63, %v739_v0 }
 0x1d7   :  { %v915_v38 = vadd.f32 %v874_v46, %v1485_v55  ;;  %v702_v7 = vadd.f32 %v671_v54, %v630_v29  ;;  %v790_v14 = vsel %vm774_vm9, %v788_v11, %v789_v52  ;;  %v941_v17 = vrot.slane %v415_v12, 2 }
 0x1d8   :  { %v1695_v19 = vmul.f32 0.0010283801, %v1561_v22  ;;  %v703_v3 = vadd.f32 %v673_v57, %v631_v4  ;;  %v842_v23 = vsel %vm826_vm13, %v840_v51, %v841_v1  ;;  %v424_v53 = vmul.f32 0.007598758, %v1561_v22 }
 0x1d9   :  { %v971_v20 = vadd.f32 %v915_v38, %v1487_v56  ;;  %v768_v8 = vadd.f32 %v738_v63, %v702_v7  ;;  %v943_v26 = vsel %vm512_vm8, %v941_v17, %v942_v9  ;;  %v1702_v0 = vmul.f32 0.036000773, %v1561_v22 }
 0x1da   :  { %v1705_v42 = vmul.f32 0.10936069, %v1561_v22  ;;  %v769_v12 = vadd.f32 %v740_v6, %v703_v3  ;;  %v452_v32 = vrot.slane %v424_v53, 1  ;;  %v1709_v34 = vmul.f32 0.21300554, %v1561_v22 }
 0x1db   :  { %v992_v52 = vsub.f32 %v971_v20, %v1638_v13  ;;  %v1713_v1 = vmul.f32 %v1666_v24, %v1666_v24  ;;  %v1717_v9 = vmul.f32 %v1676_v39, %v1676_v39  ;;  %v820_v36 = vadd.f32 %v788_v11, %v768_v8 }
 0x1dc   :  { %v1720_v27 = vmul.f32 0.26601171, %v1561_v22  ;;  %v821_v47 = vadd.f32 %v790_v14, %v769_v12  ;;  %v485_v13 = vadd.f32 %v452_v32, %v1695_v19  ;;  %v524_v37 = vrot.slane %v1702_v0, 2 }
 0x1dd   :  { %v596_v41 = vrot.slane %v1705_v42, 3  ;;  %v1725_v21 = vmax.f32 %v992_v52, 0.0  ;;  %v872_v15 = vadd.f32 %v840_v51, %v820_v36  ;;  %v668_v28 = vrot.slane %v1709_v34, 4 }
 0x1de   :  { %v785_v40 = vrot.slane %v1709_v34, 6  ;;  %v873_v45 = vadd.f32 %v842_v23, %v821_v47  ;;  %v557_v46 = vadd.f32 %v524_v37, %v485_v13  ;;  %v736_v48 = vrot.slane %v1720_v27, 5 }
 0x1df   :  { %v837_v22 = vrot.slane %v1705_v42, 7  ;;  %v887_v49 = vadd.f32 %v872_v15, %v1659_v16  ;;  %v1736_v29 = vsel %vm440_vm7, %v452_v32, %v1485_v55  ;;  %v938_v54 = vrot.slane %v1695_v19, 2 }
 0x1e0   :  { %v787_v63 = vsel %vm774_vm9, %v785_v40, %v1489_v58  ;;  %v888_v57 = vadd.f32 %v873_v45, %v1617_v25  ;;  %v629_v11 = vadd.f32 %v596_v41, %v557_v46  ;;  %v413_v38 = vmul.f32 0.0010283801, %v1567_v61 }
 0x1e1   :  { %v423_v4 = vmul.f32 0.007598758, %v1567_v61  ;;  %v913_v6 = vadd.f32 %v887_v49, %v1671_v2  ;;  %v1744_v16 = vmul.f32 0.036000773, %v1567_v61  ;;  %v568_v51 = vmul.f32 0.10936069, %v1567_v61 }
 0x1e2   :  { %v640_v7 = vmul.f32 0.21300554, %v1567_v61  ;;  %v914_v14 = vadd.f32 %v1654_v10, %v888_v57  ;;  %v701_v17 = vadd.f32 %v668_v28, %v629_v11  ;;  %v712_v25 = vmul.f32 0.26601171, %v1567_v61 }
 0x1e3   :  { %v450_v19 = vrot.slane %v423_v4, 1  ;;  %v969_v20 = vadd.f32 %v943_v26, %v913_v6  ;;  %v522_v3 = vrot.slane %v1744_v16, 2  ;;  %v594_v23 = vrot.slane %v568_v51, 3 }
 0x1e4   :  { %v666_v53 = vrot.slane %v640_v7, 4  ;;  %v970_v2 = vadd.f32 %v1683_v33, %v914_v14  ;;  %v767_v8 = vadd.f32 %v736_v48, %v701_v17  ;;  %v839_v33 = vsel %vm826_vm13, %v837_v22, %v1491_v59 }
 0x1e5   :  { %v451_v42 = vsel %vm440_vm7, %v1485_v55, %v450_v19  ;;  %v453_v52 = vsel %vm440_vm7, %v450_v19, %v452_v32  ;;  %v990_v12 = vsub.f32 %v969_v20, %v1713_v1  ;;  %v523_v34 = vsel %vm512_vm8, %v1487_v56, %v522_v3 }
 0x1e6   :  { %v484_v10 = vadd.f32 %v453_v52, %v413_v38  ;;  %v525_v61 = vsel %vm512_vm8, %v522_v3, %v524_v37  ;;  %v991_v26 = vsub.f32 %v970_v2, %v1717_v9  ;;  %v819_v36 = vadd.f32 %v787_v63, %v767_v8 }
 0x1e7   :  { %v555_v27 = vadd.f32 %v523_v34, %v451_v42  ;;  %v1764_v47 = vsel %vm512_vm8, %v938_v54, %v1487_v56  ;;  %v595_v13 = vsel %vm584_vm10, %v1493_v60, %v594_v23  ;;  %v597_v15 = vsel %vm584_vm10, %v594_v23, %v596_v41 }
 0x1e8   :  { %v556_v32 = vadd.f32 %v525_v61, %v484_v10  ;;  %v871_v45 = vadd.f32 %v839_v33, %v819_v36  ;;  %v667_v37 = vsel %vm656_vm11, %v1501_v5, %v666_v53  ;;  %v669_v49 = vsel %vm656_vm11, %v666_v53, %v668_v28 }
 0x1e9   :  { %v627_v46 = vadd.f32 %v595_v13, %v555_v27  ;;  %v735_v57 = vrot.slane %v712_v25, 5  ;;  %v784_v11 = vrot.slane %v640_v7, 6  ;;  %v836_v4 = vrot.slane %v568_v51, 7 }
 0x1ea   :  { %v628_v63 = vadd.f32 %v597_v15, %v556_v32  ;;  %v912_v6 = vadd.f32 %v871_v45, %v1485_v55  ;;  %v937_v17 = vrot.slane %v413_v38, 2  ;;  %v975_v19 = vmul.f32 %v1589_v44, %v1589_v44 }
 0x1eb   :  { %v699_v14 = vadd.f32 %v667_v37, %v627_v46  ;;  %v737_v41 = vsel %vm728_vm12, %v735_v57, %v736_v48  ;;  %v786_v3 = vsel %vm774_vm9, %v784_v11, %v785_v40  ;;  %v838_v23 = vsel %vm826_vm13, %v836_v4, %v837_v22 }
 0x1ec   :  { %v700_v20 = vadd.f32 %v669_v49, %v628_v63  ;;  %v1778_v2 = vmax.f32 %v990_v12, 0.0  ;;  %v968_v28 = vadd.f32 %v912_v6, %v1487_v56  ;;  %v939_v51 = vsel %vm512_vm8, %v937_v17, %v938_v54 }
 0x1ed   :  { %v765_v7 = vadd.f32 %v735_v57, %v699_v14  ;;  %v1782_v25 = vmax.f32 %v991_v26, 0.0  ;;  %v1014_v53 = vadd.f32 %v1713_v1, %v975_v19  ;;  %v428_v8 = vmul.f32 0.007598758, %v1571_v30 }
 0x1ee   :  { %v766_v38 = vadd.f32 %v737_v41, %v700_v20  ;;  %v986_v48 = vsub.f32 %v968_v28, %v1575_v31  ;;  %v1788_v40 = vmul.f32 0.036000773, %v1571_v30  ;;  %v1791_v22 = vmul.f32 0.10936069, %v1571_v30 }
 0x1ef   :  { %v817_v42 = vadd.f32 %v784_v11, %v765_v7  ;;  %v1794_v10 = vmul.f32 0.0010283801, %v1571_v30  ;;  %v1796_v54 = vrot.slane %v428_v8, 1  ;;  %v1799_v34 = vmul.f32 0.21300554, %v1571_v30 }
 0x1f0   :  { %v818_v12 = vadd.f32 %v786_v3, %v766_v38  ;;  %v1801_v1 = vmax.f32 %v986_v48, 0.0  ;;  %v1805_v31 = vmul.f32 %v1592_v50, %v1592_v50  ;;  %v1017_v26 = vadd.f32 0.0001, %v1014_v53 }
 0x1f1   :  { %v869_v61 = vadd.f32 %v836_v4, %v817_v42  ;;  %v491_v33 = vadd.f32 %v1796_v54, %v1794_v10  ;;  %v532_v27 = vrot.slane %v1788_v40, 2  ;;  %v717_v32 = vmul.f32 0.26601171, %v1571_v30 }
 0x1f2   :  { %v870_v36 = vadd.f32 %v838_v23, %v818_v12  ;;  %v604_v15 = vrot.slane %v1791_v22, 3  ;;  %v793_v45 = vrot.slane %v1799_v34, 6  ;;  %v845_v46 = vrot.slane %v1791_v22, 7 }
 0x1f3   :  { %v884_v13 = vadd.f32 %v869_v61, %v1744_v16  ;;  %v563_v49 = vadd.f32 %v532_v27, %v491_v33  ;;  %v676_v63 = vrot.slane %v1799_v34, 4  ;;  %v742_v57 = vrot.slane %v717_v32, 5 }
 0x1f4   :  { %v885_v37 = vadd.f32 %v870_v36, %v1702_v0  ;;  %v795_v4 = vsel %vm774_vm9, %v793_v45, %v1489_v58  ;;  %v847_v30 = vsel %vm826_vm13, %v845_v46, %v1491_v59  ;;  %v946_v16 = vrot.slane %v1794_v10, 2 }
 0x1f5   :  { %v910_v11 = vadd.f32 %v884_v13, %v453_v52  ;;  %v635_v14 = vadd.f32 %v604_v15, %v563_v49  ;;  %v417_v17 = vmul.f32 0.0010283801, %v1580_v35  ;;  %v427_v0 = vmul.f32 0.007598758, %v1580_v35 }
 0x1f6   :  { %v911_v6 = vadd.f32 %v1736_v29, %v885_v37  ;;  %v500_v41 = vmul.f32 0.036000773, %v1580_v35  ;;  %v572_v52 = vmul.f32 0.10936069, %v1580_v35  ;;  %v644_v3 = vmul.f32 0.21300554, %v1580_v35 }
 0x1f7   :  { %v966_v20 = vadd.f32 %v939_v51, %v910_v11  ;;  %v707_v23 = vadd.f32 %v676_v63, %v635_v14  ;;  %v458_v59 = vrot.slane %v427_v0, 1  ;;  %v716_v28 = vmul.f32 0.26601171, %v1580_v35 }
 0x1f8   :  { %v967_v58 = vadd.f32 %v1764_v47, %v911_v6  ;;  %v530_v29 = vrot.slane %v500_v41, 2  ;;  %v602_v38 = vrot.slane %v572_v52, 3  ;;  %v674_v53 = vrot.slane %v644_v3, 4 }
 0x1f9   :  { %v984_v7 = vsub.f32 %v966_v20, %v975_v19  ;;  %v773_v48 = vadd.f32 %v742_v57, %v707_v23  ;;  %v459_v51 = vsel %vm440_vm7, %v1485_v55, %v458_v59  ;;  %v461_v42 = vsel %vm440_vm7, %v458_v59, %v1796_v54 }
 0x1fa   :  { %v985_v8 = vsub.f32 %v967_v58, %v1805_v31  ;;  %v490_v12 = vadd.f32 %v461_v42, %v417_v17  ;;  %v531_v47 = vsel %vm512_vm8, %v1487_v56, %v530_v29  ;;  %v533_v35 = vsel %vm512_vm8, %v530_v29, %v532_v27 }
 0x1fb   :  { %v987_v22 = vmax.f32 %v984_v7, 0.0  ;;  %v825_v34 = vadd.f32 %v795_v4, %v773_v48  ;;  %v561_v61 = vadd.f32 %v531_v47, %v459_v51  ;;  %v603_v36 = vsel %vm584_vm10, %v1493_v60, %v602_v38 }
 0x1fc   :  { %v988_v19 = vmax.f32 %v985_v8, 0.0  ;;  %v562_v32 = vadd.f32 %v533_v35, %v490_v12  ;;  %v605_v13 = vsel %vm584_vm10, %v602_v38, %v604_v15  ;;  %v675_v37 = vsel %vm656_vm11, %v1501_v5, %v674_v53 }
 0x1fd   :  { %v1020_v33 = vadd.f32 %v1778_v2, %v987_v22  ;;  %v877_v11 = vadd.f32 %v847_v30, %v825_v34  ;;  %v633_v6 = vadd.f32 %v603_v36, %v561_v61  ;;  %v677_v27 = vsel %vm656_vm11, %v674_v53, %v676_v63 }
 0x1fe   :  { %v1021_v49 = vadd.f32 %v1782_v25, %v988_v19  ;;  %v634_v4 = vadd.f32 %v605_v13, %v562_v32  ;;  %v741_v0 = vrot.slane %v716_v28, 5  ;;  %v792_v20 = vrot.slane %v644_v3, 6 }
 0x1ff   :  { %v1023_v14 = vadd.f32 0.0009, %v1020_v33  ;;  %v918_v60 = vadd.f32 %v877_v11, %v1485_v55  ;;  %v705_v58 = vadd.f32 %v675_v37, %v633_v6  ;;  %v844_v2 = vrot.slane %v572_v52, 7 }
 0x200   :  { %v945_v23 = vrot.slane %v417_v17, 2  ;;  %v706_v15 = vadd.f32 %v677_v27, %v634_v4  ;;  %v743_v7 = vsel %vm728_vm12, %v741_v0, %v742_v57  ;;  %v794_v5 = vsel %vm774_vm9, %v792_v20, %v793_v45 }
 0x201   :  { %v1026_v59 = vmul.f32 %v1023_v14, %v1017_v26  ;;  %v974_v25 = vadd.f32 %v918_v60, %v1487_v56  ;;  %v771_v30 = vadd.f32 %v741_v0, %v705_v58  ;;  %v846_v63 = vsel %vm826_vm13, %v844_v2, %v845_v46 }
 0x202   :  { %v947_v3 = vsel %vm512_vm8, %v945_v23, %v946_v16  ;;  %v772_v28 = vadd.f32 %v743_v7, %v706_v15  ;;  %v981_v17 = vmul.f32 %v1666_v24, %v1589_v44  ;;  %v982_v26 = vmul.f32 %v1676_v39, %v1592_v50  ;;  %v1102_v23 = vld [vmem:[%s1893_s3] ss:$0 sm:$0xff]  ;;  %s1310_s3 = scalar_lea.vmem %s1090_s8, 16 }
 0x203   :  { %1238 = vrcp.f32 %v1026_v59  ;;  %v823_v57 = vadd.f32 %v792_v20, %v771_v30  ;;  %v983_v45 = vmul.f32 %v1626_v43, %v1557_v18  ;;  %v1015_v52 = vadd.f32 %v1717_v9, %v1805_v31  ;;  %p1311_p10 = scmp.ne.s32.totalorder %s1090_s8, %s1310_s3  ;;  %p1316_p12 = scmp.lt.s32.totalorder %s1314_s9, %s1310_s3 }
 0x204   :  { %v824_v46 = vadd.f32 %v794_v5, %v772_v28  ;;  %v1022_v29 = vadd.f32 %v1725_v21, %v1801_v1  ;;  %v1024_v44 = vadd.f32 0.0009, %v1021_v49  ;;  %v1019_v50 = vadd.f32 0.0001, %v1645_v62 }
 0x205   :  { %v875_v38 = vadd.f32 %v844_v2, %v823_v57  ;;  %v998_v53 = vsub.f32 %v974_v25, %v983_v45  ;;  %v1001_v8 = vmul.f32 2.0, %v983_v45  ;;  %v1018_v51 = vadd.f32 0.0001, %v1015_v52  ;;  %p1317_p13 = por %p1316_p12, %p1315_p11 }
 0x206   :  { %v876_v48 = vadd.f32 %v846_v63, %v824_v46  ;;  %v1025_v39 = vadd.f32 0.0009, %v1022_v29  ;;  %v897_v18 = vsel %vm440_vm7, %v1796_v54, %v1485_v55  ;;  %v999_v54 = vmul.f32 2.0, %v981_v17 }
 0x207   :  { %v890_v24 = vadd.f32 %v875_v38, %v500_v41  ;;  %v1007_v22 = vmul.f32 2.0, %v998_v53  ;;  %v1027_v9 = vmul.f32 %v1024_v44, %v1018_v51  ;;  %v1004_v21 = vadd.f32 0.0001, %v1001_v8  ;;  %p1318_p0 = pnand %p1317_p13, %p1311_p10 }
 0x208   :  { %v891_v43 = vadd.f32 %v876_v48, %v1788_v40  ;;  %v1028_v12 = vmul.f32 %v1025_v39, %v1019_v50  ;;  %v948_v41 = vsel %vm512_vm8, %v946_v16, %v1487_v56  ;;  %v1002_v13 = vadd.f32 0.0001, %v999_v54 }
 0x209   :  { %v916_v31 = vadd.f32 %v890_v24, %v461_v42  ;;  %v1010_v1 = vadd.f32 0.0009, %v1007_v22  ;;  %1240 = vrcp.f32 %v1027_v9  ;;  %v1000_v42 = vmul.f32 2.0, %v982_v26 }
 0x20a   :  { %v917_v47 = vadd.f32 %v897_v18, %v891_v43  ;;  %1242 = vrcp.f32 %v1028_v12 }
 0x20b   :  { %v972_v62 = vadd.f32 %v947_v3, %v916_v31  ;;  %v1013_v35 = vmul.f32 %v1010_v1, %v1004_v21  ;;  %v1003_v11 = vadd.f32 0.0001, %v1000_v42 }
 0x20c   :  { %v973_v34 = vadd.f32 %v948_v41, %v917_v47 }
 0x20d   :  { %v1239_v19 = vpop.eup %1238  ;;  %v996_v55 = vsub.f32 %v972_v62, %v981_v17 }
 0x20e   :  { %v1032_v40 = vmul.f32 %v1239_v19, %v1026_v59  ;;  %v997_v61 = vsub.f32 %v973_v34, %v982_v26 }
 0x20f   :  { %v1005_v36 = vmul.f32 2.0, %v996_v55 }
 0x210   :  { %v1035_v33 = vsub.f32 2.0, %v1032_v40  ;;  %v1006_v32 = vmul.f32 2.0, %v997_v61 }
 0x211   :  { %v1008_v37 = vadd.f32 0.0009, %v1005_v36 }
 0x212   :  { %v1038_v49 = vmul.f32 %v1239_v19, %v1035_v33  ;;  %v1009_v10 = vadd.f32 0.0009, %v1006_v32 }
 0x213   :  { %v1011_v6 = vmul.f32 %v1008_v37, %v1002_v13  ;;  %v1241_v56 = vpop.eup %1240 }
 0x214   :  { %v1012_v16 = vmul.f32 %v1009_v10, %v1003_v11  ;;  %v1243_v27 = vpop.eup %1242  ;;  %v1033_v14 = vmul.f32 %v1241_v56, %v1027_v9 }
 0x215   :  { %v1041_v4 = vmul.f32 %v1038_v49, %v1011_v6  ;;  %v1034_v0 = vmul.f32 %v1243_v27, %v1028_v12 }
 0x216   :  { %v1036_v20 = vsub.f32 2.0, %v1033_v14 }
 0x217   :  { %v1037_v60 = vsub.f32 2.0, %v1034_v0  ;;  %v1053_v15 = vmul.f32 %v1102_v23, %v1041_v4 }
 0x218   :  { %v1039_v58 = vmul.f32 %v1241_v56, %v1036_v20 }
 0x219   :  { %v1040_v2 = vmul.f32 %v1243_v27, %v1037_v60  ;;  %v1059_v30 = vrot.slane %v1053_v15, 3 }
 0x21a   :  { %v1042_v59 = vmul.f32 %v1039_v58, %v1012_v16 }
 0x21b   :  { %v1043_v7 = vmul.f32 %v1040_v2, %v1013_v35 }
 0x21c   :  { %v1054_v5 = vmul.f32 %v1102_v23, %v1042_v59 }
 0x21d   :  { %v1055_v25 = vmul.f32 %v1102_v23, %v1043_v7 }
 0x21e   :  { %v1060_v63 = vrot.slane %v1054_v5, 3 }
 0x21f   :  { %v1062_v3 = vrot.slane %v1055_v25, 3 }
 0x220   :  { %v1061_v28 = vsel %vm584_vm10, %v1059_v30, %v1060_v63 }
 0x221   :  { %v1063_v17 = vsel %vm584_vm10, %v1060_v63, %v1062_v3 }
 0x222   :  { %v1075_v26 = vadd.f32 %v1063_v17, %v1061_v28 }
 0x224   :  { %v1076_v57 = vrot.slane %v1075_v26, 4 }
 0x226   :  { %v1077_v45 = vadd.f32 %v1076_v57, %v1075_v26 }
 0x228   :  { %v1078_v52 = vrot.slane %v1077_v45, 2 }
 0x22a   :  { %v1079_v46 = vadd.f32 %v1078_v52, %v1077_v45 }
 0x22c   :  { %v1080_v29 = vrot.slane %v1079_v46, 1 }
 0x22e   :  { %v1081_v38 = vadd.f32 %v1080_v29, %v1079_v46 }
 0x230   :  { %1082 = vst [vmem:[#allocation9] sm:$0x1] %v1081_v38 }
 0x231   :  { %1321 = shalt.err (!%p1318_p0)
}
 0x232   :  { %s1322_s12 = scalar_lea.hbm %s1894_s4, 16 }
 0x233   :  { %p1323_p1 = scmp.ne.s32.totalorder %s1894_s4, %s1322_s12  ;;  %p1326_p2 = scmp.lt.u32.totalorder %s1322_s12, %s1894_s4 }
 0x235   :  { %p1328_p3 = pnand %p1326_p2, %p1323_p1 }
 0x237   :  { %1331 = shalt.err (!%p1328_p3)
}
 0x238   :  { %1092 = dma.vmem_to_hbm [thread:$0]  %s1090_s8, 16, %s1894_s4, [#allocation5]  }
 0x239   :  { %1336 = dma.done.wait [#allocation5], 16  }
 0x23a   :  { %1337 = vsyncadd [#allocation5], 4294967280 }
 0x23b   :  { %1096 = vsyncpa [#allocation4], 1 }
 0x23c   :  { %1097 = vsyncpa [#allocation7], 1 }
 0x23d   :  { %1098 = vsyncpa [#allocation5], 1 }

</bundles_post_ra>
